<compile_context>
chip_gen: v5e
topology: v5e:2x2
jax: 0.10.0
libtpu: 0.0.40
codegen_flags: <defaults>
</compile_context>

<pallas_src>
import math
import jax
import jax.numpy as jnp
from jax import lax
from jax.experimental import pallas as pl
from jax.experimental.pallas import tpu as pltpu

# ---- small config (scaled-down but structurally identical to GPT_CONFIG) ----
VOCAB  = 256        # vocab_size
SEQ    = 16         # context_length
D      = 128        # emb_dim
H      = 4          # n_heads
HD     = D // H     # head_dim (32)
FF     = 4 * D      # feed-forward hidden (512)
LAYERS = 2          # n_layers
B      = 2          # batch
EPS    = 1e-5       # nn.LayerNorm default eps

# packed-parameter slab row indices (one slab per layer, shape (8, FF))
_B1, _BO, _B2, _LN1G, _LN1B, _LN2G, _LN2B = range(7)
SLAB_ROWS = 8


def _gelu(x):
    # exact GELU (PyTorch nn.GELU default)
    return 0.5 * x * (1.0 + lax.erf(x * (1.0 / math.sqrt(2.0))))


def _layernorm(h, g, b):
    mu = jnp.mean(h, axis=-1, keepdims=True)
    var = jnp.mean(jnp.square(h - mu), axis=-1, keepdims=True)
    return (h - mu) * lax.rsqrt(var + EPS) * g + b


# ------------------------- fused whole-model kernel -------------------------
# grid = (B, LAYERS): one batch element through one transformer layer per step.

def gpt_kernel(ids_ref, emb_ref, pe_ref, wqkv_ref, wo_ref, w1_ref, w2_ref,
               slab_ref, wout_ref, bout_ref, o_ref, x_scr):
    l = pl.program_id(1)

    # ---- layer-0 step: fused embedding gather (one-hot matmul) + pos. encoding
    @pl.when(l == 0)
    def _():
        iota = lax.broadcasted_iota(jnp.int32, (SEQ, VOCAB), 1)
        onehot = (iota == ids_ref[...]).astype(jnp.float32)        # (S, VOCAB)
        x0 = jnp.dot(onehot, emb_ref[...],
                     preferred_element_type=jnp.float32)           # (S, D)
        x_scr[...] = x0 + pe_ref[...]

    x = x_scr[...]                                                 # (S, D) f32

    # ---- per-layer packed small params (single dense slab)
    P = slab_ref[...]                                              # (8, FF) f32
    b1   = P[_B1:_B1 + 1, :]                                       # (1, FF)
    bo   = P[_BO:_BO + 1, 0:D]                                     # (1, D)
    b2   = P[_B2:_B2 + 1, 0:D]
    ln1g = P[_LN1G:_LN1G + 1, 0:D]
    ln1b = P[_LN1B:_LN1B + 1, 0:D]
    ln2g = P[_LN2G:_LN2G + 1, 0:D]
    ln2b = P[_LN2B:_LN2B + 1, 0:D]

    # ---- multi-head attention, head axis batched (no lane gather/scatter) ----
    xb = x.astype(jnp.bfloat16)
    xh = jnp.broadcast_to(xb[None, :, :], (3 * H, SEQ, D))         # (3H, S, D)
    qkv = jnp.einsum('hsd,hde->hse', xh, wqkv_ref[...],
                     preferred_element_type=jnp.float32)           # (3H, S, HD)
    qh = qkv[0:H].astype(jnp.bfloat16)                             # (H, S, HD)
    kh = qkv[H:2 * H].astype(jnp.bfloat16)
    vh = qkv[2 * H:3 * H].astype(jnp.bfloat16)

    # scores (1/sqrt(HD) folded into Wq at init), softmax, context
    s = jnp.einsum('hqd,hkd->hqk', qh, kh,
                   preferred_element_type=jnp.float32)             # (H, S, S)
    s = s - jnp.max(s, axis=-1, keepdims=True)
    p = jnp.exp(s)
    p = p * pl.reciprocal(jnp.sum(p, axis=-1, keepdims=True), approx=True)
    ctx = jnp.einsum('hqk,hkd->hqd', p.astype(jnp.bfloat16), vh,
                     preferred_element_type=jnp.float32)           # (H, S, HD)

    # output projection with head-major Wo; head concat folded into the h-sum
    attn = jnp.einsum('hsd,hde->hse', ctx.astype(jnp.bfloat16), wo_ref[...],
                      preferred_element_type=jnp.float32)          # (H, S, D)
    attn = jnp.sum(attn, axis=0) + bo                              # (S, D)

    # post-norm residual 1: ln1(x + mha(x))
    h1 = _layernorm(x + attn, ln1g, ln1b)

    # ---- feed-forward: Linear -> GELU -> Linear
    ff = jnp.dot(h1.astype(jnp.bfloat16), w1_ref[...],
                 preferred_element_type=jnp.float32) + b1
    ff = _gelu(ff)
    ff = jnp.dot(ff.astype(jnp.bfloat16), w2_ref[...],
                 preferred_element_type=jnp.float32) + b2

    # post-norm residual 2: ln2(h1 + ff(h1)); carry residual in VMEM scratch
    x_new = _layernorm(h1 + ff, ln2g, ln2b)
    x_scr[...] = x_new

    # ---- last layer step: final vocab projection (lane-dense VOCAB=256 output)
    @pl.when(l == LAYERS - 1)
    def _():
        o_ref[...] = jnp.dot(x_new.astype(jnp.bfloat16), wout_ref[...],
                             preferred_element_type=jnp.float32) + bout_ref[...]


def gpt_pallas(input_ids, p):
    ids3 = input_ids.reshape(B, SEQ, 1).astype(jnp.int32)
    in_specs = [
        pl.BlockSpec((None, SEQ, 1),        lambda b, l: (b, 0, 0)),     # ids
        pl.BlockSpec((VOCAB, D),            lambda b, l: (0, 0)),        # emb (resident)
        pl.BlockSpec((SEQ, D),              lambda b, l: (0, 0)),        # pe  (resident)
        pl.BlockSpec((None, 3 * H, D, HD),  lambda b, l: (l, 0, 0, 0)),  # wqkv (per layer)
        pl.BlockSpec((None, H, HD, D),      lambda b, l: (l, 0, 0, 0)),  # wo   (per layer)
        pl.BlockSpec((None, D, FF),         lambda b, l: (l, 0, 0)),     # w1   (per layer)
        pl.BlockSpec((None, FF, D),         lambda b, l: (l, 0, 0)),     # w2   (per layer)
        pl.BlockSpec((None, SLAB_ROWS, FF), lambda b, l: (l, 0, 0)),     # packed params
        pl.BlockSpec((D, VOCAB),            lambda b, l: (0, 0)),        # w_out (resident)
        pl.BlockSpec((1, VOCAB),            lambda b, l: (0, 0)),        # b_out (resident)
    ]
    out_specs = pl.BlockSpec((None, SEQ, VOCAB), lambda b, l: (b, 0, 0))
    return pl.pallas_call(
        gpt_kernel,
        out_shape=jax.ShapeDtypeStruct((B, SEQ, VOCAB), jnp.float32),
        grid_spec=pltpu.PrefetchScalarGridSpec(
            num_scalar_prefetch=0,
            grid=(B, LAYERS),
            in_specs=in_specs,
            out_specs=out_specs,
            scratch_shapes=[pltpu.VMEM((SEQ, D), jnp.float32)]),
        compiler_params=pltpu.CompilerParams(
            dimension_semantics=("parallel", "arbitrary")),
    )(ids3, p["emb"], p["pe"], p["wqkv"], p["wo"], p["w1"], p["w2"],
      p["slab"], p["w_out"], p["b_out"])


# ------------------------------ parameters ----------------------------------

def _dense(key, shape, scale=0.02):
    return (scale * jax.random.normal(key, shape)).astype(jnp.float32)


def init_params(key):
    keys = iter(jax.random.split(key, 9 * LAYERS + 3))

    emb = _dense(next(keys), (VOCAB, D))

    # sinusoidal positional encoding (matches the torch buffer construction)
    position = jnp.arange(SEQ, dtype=jnp.float32)[:, None]
    div_term = jnp.exp(jnp.arange(0, D, 2, dtype=jnp.float32)
                       * (-(math.log(10000.0) / D)))
    pe = jnp.zeros((SEQ, D), dtype=jnp.float32)
    pe = pe.at[:, 0::2].set(jnp.sin(position * div_term))
    pe = pe.at[:, 1::2].set(jnp.cos(position * div_term))

    blocks = []
    for _ in range(LAYERS):
        blocks.append({
            "wq": _dense(next(keys), (D, D)),       # qkv_bias=False
            "wk": _dense(next(keys), (D, D)),
            "wv": _dense(next(keys), (D, D)),
            "wo": _dense(next(keys), (D, D)),
            "bo": _dense(next(keys), (D,)),
            "w1": _dense(next(keys), (D, FF)),
            "b1": _dense(next(keys), (FF,)),
            "w2": _dense(next(keys), (FF, D)),
            "b2": _dense(next(keys), (D,)),
            "ln1_g": jnp.ones((D,), jnp.float32),
            "ln1_b": jnp.zeros((D,), jnp.float32),
            "ln2_g": jnp.ones((D,), jnp.float32),
            "ln2_b": jnp.zeros((D,), jnp.float32),
        })

    w_out = _dense(next(keys), (D, VOCAB))
    b_out = _dense(next(keys), (VOCAB,))

    # f32 master copy for the pure-JAX reference check
    ref = {"emb": emb, "pe": pe, "blocks": blocks, "w_out": w_out, "b_out": b_out}

    inv_sqrt_hd = 1.0 / math.sqrt(HD)

    def head_major_in(w, scale=1.0):      # (D, D) -> (H, D, HD) head-major
        return (w * scale).reshape(D, H, HD).transpose(1, 0, 2)

    def pad_ff(v):                        # (D,) -> (FF,) zero-padded slab row
        return jnp.concatenate([v, jnp.zeros((FF - D,), jnp.float32)])

    wqkv = jnp.stack([jnp.concatenate([head_major_in(blk["wq"], inv_sqrt_hd),
                                       head_major_in(blk["wk"]),
                                       head_major_in(blk["wv"])], axis=0)
                      for blk in blocks]).astype(jnp.bfloat16)          # (L,3H,D,HD)
    wo = jnp.stack([blk["wo"].reshape(H, HD, D)
                    for blk in blocks]).astype(jnp.bfloat16)            # (L,H,HD,D)
    w1 = jnp.stack([blk["w1"] for blk in blocks]).astype(jnp.bfloat16)  # (L,D,FF)
    w2 = jnp.stack([blk["w2"] for blk in blocks]).astype(jnp.bfloat16)  # (L,FF,D)
    slab = jnp.stack([jnp.stack([blk["b1"],
                                 pad_ff(blk["bo"]), pad_ff(blk["b2"]),
                                 pad_ff(blk["ln1_g"]), pad_ff(blk["ln1_b"]),
                                 pad_ff(blk["ln2_g"]), pad_ff(blk["ln2_b"]),
                                 jnp.zeros((FF,), jnp.float32)])
                      for blk in blocks])                               # (L,8,FF) f32

    kern = {"emb": emb, "pe": pe, "wqkv": wqkv, "wo": wo, "w1": w1, "w2": w2,
            "slab": slab,
            "w_out": w_out.astype(jnp.bfloat16),
            "b_out": b_out.reshape(1, VOCAB)}
    return kern, ref


# ------------------------------ full forward --------------------------------

def gpt_forward(params, input_ids):
    # everything (embedding gather, PE add, 2 blocks, vocab projection) is fused
    return gpt_pallas(input_ids, params)                # (B, S, VOCAB)


def gpt_reference(ref, input_ids):
    # pure-JAX f32 mirror of the PyTorch module (for a loose parity check)
    x = ref["emb"][input_ids] + ref["pe"][None, :, :]
    for blk in ref["blocks"]:
        q = x @ blk["wq"]
        k = x @ blk["wk"]
        v = x @ blk["wv"]

        def split(t):
            return t.reshape(B, SEQ, H, HD).transpose(0, 2, 1, 3)

        qh, kh, vh = split(q), split(k), split(v)
        s = jnp.einsum('bhqd,bhkd->bhqk', qh, kh) / math.sqrt(HD)
        p = jax.nn.softmax(s, axis=-1)
        ctx = jnp.einsum('bhqk,bhkd->bhqd', p, vh)
        ctx = ctx.transpose(0, 2, 1, 3).reshape(B, SEQ, D)
        attn = ctx @ blk["wo"] + blk["bo"]
        h1 = _layernorm(x + attn, blk["ln1_g"], blk["ln1_b"])
        ff = _gelu(h1 @ blk["w1"] + blk["b1"]) @ blk["w2"] + blk["b2"]
        x = _layernorm(h1 + ff, blk["ln2_g"], blk["ln2_b"])
    return x @ ref["w_out"] + ref["b_out"]


if __name__ == "__main__":
    key = jax.random.PRNGKey(0)
    k_param, k_ids = jax.random.split(key)
    kern_params, ref_params = init_params(k_param)
    input_ids = jax.random.randint(k_ids, (B, SEQ), 0, VOCAB, dtype=jnp.int32)

    logits = jax.jit(gpt_forward)(kern_params, input_ids)
    logits = jax.block_until_ready(logits)

    assert logits.shape == (B, SEQ, VOCAB)
    assert bool(jnp.all(jnp.isfinite(logits)))

    # loose parity vs. a pure-JAX f32 reference (kernel uses bf16 MXU operands)
    ref_logits = jax.jit(gpt_reference)(ref_params, input_ids)
    max_abs = float(jnp.max(jnp.abs(logits - ref_logits)))
    assert max_abs < 0.1, f"max abs diff vs f32 reference too large: {max_abs}"

    print("KERNEL_OK")
</pallas_src>

<mosaic_0001>
module attributes {stable_mosaic.version = 11 : i64} {
  func.func @gpt_kernel(%arg0: i32, %arg1: i32, %arg2: memref<1x16x1xi32, #tpu.memory_space<vmem>>, %arg3: memref<256x128xf32, #tpu.memory_space<vmem>>, %arg4: memref<16x128xf32, #tpu.memory_space<vmem>>, %arg5: memref<1x12x128x32xbf16, #tpu.memory_space<vmem>>, %arg6: memref<1x4x32x128xbf16, #tpu.memory_space<vmem>>, %arg7: memref<1x128x512xbf16, #tpu.memory_space<vmem>>, %arg8: memref<1x512x128xbf16, #tpu.memory_space<vmem>>, %arg9: memref<1x8x512xf32, #tpu.memory_space<vmem>>, %arg10: memref<128x256xbf16, #tpu.memory_space<vmem>>, %arg11: memref<1x256xf32, #tpu.memory_space<vmem>>, %arg12: memref<1x16x256xf32, #tpu.memory_space<vmem>>, %arg13: memref<16x128xf32, #tpu.memory_space<vmem>>) attributes {dimension_semantics = [#tpu.dimension_semantics<parallel>, #tpu.dimension_semantics<arbitrary>], iteration_bounds = array<i64: 2, 2>, scalar_prefetch = 0 : i64, scratch_operands = 1 : i64, tpu.core_type = #tpu.core_type<tc>, window_params = [{transform_indices = @transform_0, window_bounds = array<i64: 1, 16, 1>}, {pipeline_mode = #tpu.pipeline_mode<synchronous>, transform_indices = @transform_1, window_bounds = array<i64: 256, 128>}, {pipeline_mode = #tpu.pipeline_mode<synchronous>, transform_indices = @transform_2, window_bounds = array<i64: 16, 128>}, {transform_indices = @transform_3, window_bounds = array<i64: 1, 12, 128, 32>}, {transform_indices = @transform_4, window_bounds = array<i64: 1, 4, 32, 128>}, {transform_indices = @transform_5, window_bounds = array<i64: 1, 128, 512>}, {transform_indices = @transform_6, window_bounds = array<i64: 1, 512, 128>}, {transform_indices = @transform_7, window_bounds = array<i64: 1, 8, 512>}, {pipeline_mode = #tpu.pipeline_mode<synchronous>, transform_indices = @transform_8, window_bounds = array<i64: 128, 256>}, {pipeline_mode = #tpu.pipeline_mode<synchronous>, transform_indices = @transform_9, window_bounds = array<i64: 1, 256>}, {transform_indices = @transform_10, window_bounds = array<i64: 1, 16, 256>}]} {
    %c0_i32 = arith.constant 0 : i32
    %0 = arith.cmpi eq, %arg1, %c0_i32 : i32
    %1 = arith.extui %0 : i1 to i32
    %c0_i32_0 = arith.constant 0 : i32
    %2 = arith.cmpi ne, %1, %c0_i32_0 : i32
    scf.if %2 {
      %116 = tpu.iota {dimensions = array<i32: 1>} : vector<16x256xi32>
      %c0_43 = arith.constant 0 : index
      %c0_44 = arith.constant 0 : index
      %c0_45 = arith.constant 0 : index
      %117 = vector.load %arg2[%c0_43, %c0_44, %c0_45] : memref<1x16x1xi32, #tpu.memory_space<vmem>>, vector<1x16x1xi32>
      %118 = vector.shape_cast %117 : vector<1x16x1xi32> to vector<16x1xi32>
      %119 = vector.broadcast %118 : vector<16x1xi32> to vector<16x256xi32>
      %120 = arith.cmpi eq, %116, %119 : vector<16x256xi32>
      %121 = arith.extui %120 : vector<16x256xi1> to vector<16x256xi32>
      %122 = arith.sitofp %121 : vector<16x256xi32> to vector<16x256xf32>
      %c0_46 = arith.constant 0 : index
      %c0_47 = arith.constant 0 : index
      %123 = vector.load %arg3[%c0_46, %c0_47] : memref<256x128xf32, #tpu.memory_space<vmem>>, vector<256x128xf32>
      %cst_48 = arith.constant dense<0.000000e+00> : vector<16x128xf32>
      %124 = tpu.matmul %122, %123, %cst_48 {dimension_numbers = #tpu.dot_dimension_numbers<[1], [0], [0], [1], [0, 0, 1, 1], [], []>} : vector<16x256xf32>, vector<256x128xf32>, vector<16x128xf32> -> vector<16x128xf32>
      %c0_49 = arith.constant 0 : index
      %c0_50 = arith.constant 0 : index
      %125 = vector.load %arg4[%c0_49, %c0_50] : memref<16x128xf32, #tpu.memory_space<vmem>>, vector<16x128xf32>
      %126 = arith.addf %124, %125 : vector<16x128xf32>
      %c0_51 = arith.constant 0 : index
      %c0_52 = arith.constant 0 : index
      %127 = vector.load %arg13[%c0_51, %c0_52] : memref<16x128xf32, #tpu.memory_space<vmem>>, vector<16x128xf32>
      tpu.vector_store %arg13[%c0_51, %c0_52], %126 {strides = array<i32>} : memref<16x128xf32, #tpu.memory_space<vmem>>, vector<16x128xf32>,
    } else {
    }
    %c0 = arith.constant 0 : index
    %c0_1 = arith.constant 0 : index
    %3 = vector.load %arg13[%c0, %c0_1] : memref<16x128xf32, #tpu.memory_space<vmem>>, vector<16x128xf32>
    %c0_2 = arith.constant 0 : index
    %c0_3 = arith.constant 0 : index
    %c0_4 = arith.constant 0 : index
    %4 = vector.load %arg9[%c0_2, %c0_3, %c0_4] : memref<1x8x512xf32, #tpu.memory_space<vmem>>, vector<1x8x512xf32>
    %5 = vector.shape_cast %4 : vector<1x8x512xf32> to vector<8x512xf32>
    %6 = vector.extract_strided_slice %5 {offsets = [0, 0], sizes = [1, 512], strides = [1, 1]} : vector<8x512xf32> to vector<1x512xf32>
    %7 = vector.extract_strided_slice %5 {offsets = [1, 0], sizes = [1, 128], strides = [1, 1]} : vector<8x512xf32> to vector<1x128xf32>
    %8 = vector.extract_strided_slice %5 {offsets = [2, 0], sizes = [1, 128], strides = [1, 1]} : vector<8x512xf32> to vector<1x128xf32>
    %9 = vector.extract_strided_slice %5 {offsets = [3, 0], sizes = [1, 128], strides = [1, 1]} : vector<8x512xf32> to vector<1x128xf32>
    %10 = vector.extract_strided_slice %5 {offsets = [4, 0], sizes = [1, 128], strides = [1, 1]} : vector<8x512xf32> to vector<1x128xf32>
    %11 = vector.extract_strided_slice %5 {offsets = [5, 0], sizes = [1, 128], strides = [1, 1]} : vector<8x512xf32> to vector<1x128xf32>
    %12 = vector.extract_strided_slice %5 {offsets = [6, 0], sizes = [1, 128], strides = [1, 1]} : vector<8x512xf32> to vector<1x128xf32>
    %13 = arith.truncf %3 : vector<16x128xf32> to vector<16x128xbf16>
    %14 = vector.shape_cast %13 : vector<16x128xbf16> to vector<1x16x128xbf16>
    %15 = vector.shape_cast %14 : vector<1x16x128xbf16> to vector<1x16x128xbf16>
    %16 = vector.broadcast %15 : vector<1x16x128xbf16> to vector<12x16x128xbf16>
    %c0_5 = arith.constant 0 : index
    %c0_6 = arith.constant 0 : index
    %c0_7 = arith.constant 0 : index
    %c0_8 = arith.constant 0 : index
    %17 = vector.load %arg5[%c0_5, %c0_6, %c0_7, %c0_8] : memref<1x12x128x32xbf16, #tpu.memory_space<vmem>>, vector<1x12x128x32xbf16>
    %18 = vector.shape_cast %17 : vector<1x12x128x32xbf16> to vector<12x128x32xbf16>
    "tpu.trace_start"() <{level = 10 : i32, message = "hsd,hde->hse"}> : () -> ()
    %cst = arith.constant dense<0.000000e+00> : vector<12x16x32xf32>
    %19 = tpu.matmul %16, %18, %cst {dimension_numbers = #tpu.dot_dimension_numbers<[2], [1], [1], [2], [0, 0, 0, 1, 1, 2], [0], [0]>} : vector<12x16x128xbf16>, vector<12x128x32xbf16>, vector<12x16x32xf32> -> vector<12x16x32xf32>
    "tpu.trace_stop"() : () -> ()
    %20 = vector.extract_strided_slice %19 {offsets = [0, 0, 0], sizes = [4, 16, 32], strides = [1, 1, 1]} : vector<12x16x32xf32> to vector<4x16x32xf32>
    %21 = arith.truncf %20 : vector<4x16x32xf32> to vector<4x16x32xbf16>
    %22 = vector.extract_strided_slice %19 {offsets = [4, 0, 0], sizes = [4, 16, 32], strides = [1, 1, 1]} : vector<12x16x32xf32> to vector<4x16x32xf32>
    %23 = arith.truncf %22 : vector<4x16x32xf32> to vector<4x16x32xbf16>
    %24 = vector.extract_strided_slice %19 {offsets = [8, 0, 0], sizes = [4, 16, 32], strides = [1, 1, 1]} : vector<12x16x32xf32> to vector<4x16x32xf32>
    %25 = arith.truncf %24 : vector<4x16x32xf32> to vector<4x16x32xbf16>
    "tpu.trace_start"() <{level = 10 : i32, message = "hqd,hkd->hqk"}> : () -> ()
    %cst_9 = arith.constant dense<0.000000e+00> : vector<4x16x16xf32>
    %26 = tpu.matmul %21, %23, %cst_9 {dimension_numbers = #tpu.dot_dimension_numbers<[2], [2], [1], [1], [0, 0, 0, 1, 1, 1], [0], [0]>} : vector<4x16x32xbf16>, vector<4x16x32xbf16>, vector<4x16x16xf32> -> vector<4x16x16xf32>
    "tpu.trace_stop"() : () -> ()
    %cst_10 = arith.constant dense<0xFF800000> : vector<4x16xf32>
    %27 = vector.multi_reduction <maximumf>, %26, %cst_10 [2] : vector<4x16x16xf32> to vector<4x16xf32>
    %28 = vector.shape_cast %27 : vector<4x16xf32> to vector<4x16x1xf32>
    %29 = vector.broadcast %28 : vector<4x16x1xf32> to vector<4x16x16xf32>
    %30 = arith.subf %26, %29 : vector<4x16x16xf32>
    %31 = math.exp %30 : vector<4x16x16xf32>
    %cst_11 = arith.constant dense<0.000000e+00> : vector<4x16xf32>
    %32 = vector.multi_reduction <add>, %31, %cst_11 [2] : vector<4x16x16xf32> to vector<4x16xf32>
    %33 = vector.shape_cast %32 : vector<4x16xf32> to vector<4x16x1xf32>
    %34 = tpu.reciprocal %33 {approx = true} : vector<4x16x1xf32> -> vector<4x16x1xf32>
    %35 = vector.broadcast %34 : vector<4x16x1xf32> to vector<4x16x16xf32>
    %36 = arith.mulf %31, %35 : vector<4x16x16xf32>
    %37 = arith.truncf %36 : vector<4x16x16xf32> to vector<4x16x16xbf16>
    "tpu.trace_start"() <{level = 10 : i32, message = "hqk,hkd->hqd"}> : () -> ()
    %cst_12 = arith.constant dense<0.000000e+00> : vector<4x16x32xf32>
    %38 = tpu.matmul %37, %25, %cst_12 {dimension_numbers = #tpu.dot_dimension_numbers<[2], [1], [1], [2], [0, 0, 0, 1, 1, 2], [0], [0]>} : vector<4x16x16xbf16>, vector<4x16x32xbf16>, vector<4x16x32xf32> -> vector<4x16x32xf32>
    "tpu.trace_stop"() : () -> ()
    %39 = arith.truncf %38 : vector<4x16x32xf32> to vector<4x16x32xbf16>
    %c0_13 = arith.constant 0 : index
    %c0_14 = arith.constant 0 : index
    %c0_15 = arith.constant 0 : index
    %c0_16 = arith.constant 0 : index
    %40 = vector.load %arg6[%c0_13, %c0_14, %c0_15, %c0_16] : memref<1x4x32x128xbf16, #tpu.memory_space<vmem>>, vector<1x4x32x128xbf16>
    %41 = vector.shape_cast %40 : vector<1x4x32x128xbf16> to vector<4x32x128xbf16>
    "tpu.trace_start"() <{level = 10 : i32, message = "hsd,hde->hse"}> : () -> ()
    %cst_17 = arith.constant dense<0.000000e+00> : vector<4x16x128xf32>
    %42 = tpu.matmul %39, %41, %cst_17 {dimension_numbers = #tpu.dot_dimension_numbers<[2], [1], [1], [2], [0, 0, 0, 1, 1, 2], [0], [0]>} : vector<4x16x32xbf16>, vector<4x32x128xbf16>, vector<4x16x128xf32> -> vector<4x16x128xf32>
    "tpu.trace_stop"() : () -> ()
    %cst_18 = arith.constant dense<0.000000e+00> : vector<16x128xf32>
    %43 = vector.multi_reduction <add>, %42, %cst_18 [0] : vector<4x16x128xf32> to vector<16x128xf32>
    %44 = vector.broadcast %7 : vector<1x128xf32> to vector<16x128xf32>
    %45 = arith.addf %43, %44 : vector<16x128xf32>
    %46 = arith.addf %3, %45 : vector<16x128xf32>
    %cst_19 = arith.constant dense<0.000000e+00> : vector<16xf32>
    %47 = vector.multi_reduction <add>, %46, %cst_19 [1] : vector<16x128xf32> to vector<16xf32>
    %48 = vector.shape_cast %47 : vector<16xf32> to vector<16x1xf32>
    %cst_20 = arith.constant 1.280000e+02 : f32
    %49 = vector.broadcast %cst_20 : f32 to vector<16x1xf32>
    %50 = arith.divf %48, %49 : vector<16x1xf32>
    %51 = vector.broadcast %50 : vector<16x1xf32> to vector<16x128xf32>
    %52 = arith.subf %46, %51 : vector<16x128xf32>
    %53 = arith.mulf %52, %52 : vector<16x128xf32>
    %cst_21 = arith.constant dense<0.000000e+00> : vector<16xf32>
    %54 = vector.multi_reduction <add>, %53, %cst_21 [1] : vector<16x128xf32> to vector<16xf32>
    %55 = vector.shape_cast %54 : vector<16xf32> to vector<16x1xf32>
    %cst_22 = arith.constant 1.280000e+02 : f32
    %56 = vector.broadcast %cst_22 : f32 to vector<16x1xf32>
    %57 = arith.divf %55, %56 : vector<16x1xf32>
    %58 = vector.broadcast %50 : vector<16x1xf32> to vector<16x128xf32>
    %59 = arith.subf %46, %58 : vector<16x128xf32>
    %cst_23 = arith.constant 9.99999974E-6 : f32
    %60 = vector.broadcast %cst_23 : f32 to vector<16x1xf32>
    %61 = arith.addf %57, %60 : vector<16x1xf32>
    %62 = math.rsqrt %61 : vector<16x1xf32>
    %63 = vector.broadcast %62 : vector<16x1xf32> to vector<16x128xf32>
    %64 = arith.mulf %59, %63 : vector<16x128xf32>
    %65 = vector.broadcast %9 : vector<1x128xf32> to vector<16x128xf32>
    %66 = arith.mulf %64, %65 : vector<16x128xf32>
    %67 = vector.broadcast %10 : vector<1x128xf32> to vector<16x128xf32>
    %68 = arith.addf %66, %67 : vector<16x128xf32>
    %69 = arith.truncf %68 : vector<16x128xf32> to vector<16x128xbf16>
    %c0_24 = arith.constant 0 : index
    %c0_25 = arith.constant 0 : index
    %c0_26 = arith.constant 0 : index
    %70 = vector.load %arg7[%c0_24, %c0_25, %c0_26] : memref<1x128x512xbf16, #tpu.memory_space<vmem>>, vector<1x128x512xbf16>
    %71 = vector.shape_cast %70 : vector<1x128x512xbf16> to vector<128x512xbf16>
    %cst_27 = arith.constant dense<0.000000e+00> : vector<16x512xf32>
    %72 = tpu.matmul %69, %71, %cst_27 {dimension_numbers = #tpu.dot_dimension_numbers<[1], [0], [0], [1], [0, 0, 1, 1], [], []>} : vector<16x128xbf16>, vector<128x512xbf16>, vector<16x512xf32> -> vector<16x512xf32>
    %73 = vector.broadcast %6 : vector<1x512xf32> to vector<16x512xf32>
    %74 = arith.addf %72, %73 : vector<16x512xf32>
    %cst_28 = arith.constant 5.000000e-01 : f32
    %75 = vector.broadcast %cst_28 : f32 to vector<16x512xf32>
    %76 = arith.mulf %75, %74 : vector<16x512xf32>
    %cst_29 = arith.constant 0.707106769 : f32
    %77 = vector.broadcast %cst_29 : f32 to vector<16x512xf32>
    %78 = arith.mulf %74, %77 : vector<16x512xf32>
    %79 = math.erf %78 : vector<16x512xf32>
    %cst_30 = arith.constant 1.000000e+00 : f32
    %80 = vector.broadcast %cst_30 : f32 to vector<16x512xf32>
    %81 = arith.addf %80, %79 : vector<16x512xf32>
    %82 = arith.mulf %76, %81 : vector<16x512xf32>
    %83 = arith.truncf %82 : vector<16x512xf32> to vector<16x512xbf16>
    %c0_31 = arith.constant 0 : index
    %c0_32 = arith.constant 0 : index
    %c0_33 = arith.constant 0 : index
    %84 = vector.load %arg8[%c0_31, %c0_32, %c0_33] : memref<1x512x128xbf16, #tpu.memory_space<vmem>>, vector<1x512x128xbf16>
    %85 = vector.shape_cast %84 : vector<1x512x128xbf16> to vector<512x128xbf16>
    %cst_34 = arith.constant dense<0.000000e+00> : vector<16x128xf32>
    %86 = tpu.matmul %83, %85, %cst_34 {dimension_numbers = #tpu.dot_dimension_numbers<[1], [0], [0], [1], [0, 0, 1, 1], [], []>} : vector<16x512xbf16>, vector<512x128xbf16>, vector<16x128xf32> -> vector<16x128xf32>
    %87 = vector.broadcast %8 : vector<1x128xf32> to vector<16x128xf32>
    %88 = arith.addf %86, %87 : vector<16x128xf32>
    %89 = arith.addf %68, %88 : vector<16x128xf32>
    %cst_35 = arith.constant dense<0.000000e+00> : vector<16xf32>
    %90 = vector.multi_reduction <add>, %89, %cst_35 [1] : vector<16x128xf32> to vector<16xf32>
    %91 = vector.shape_cast %90 : vector<16xf32> to vector<16x1xf32>
    %cst_36 = arith.constant 1.280000e+02 : f32
    %92 = vector.broadcast %cst_36 : f32 to vector<16x1xf32>
    %93 = arith.divf %91, %92 : vector<16x1xf32>
    %94 = vector.broadcast %93 : vector<16x1xf32> to vector<16x128xf32>
    %95 = arith.subf %89, %94 : vector<16x128xf32>
    %96 = arith.mulf %95, %95 : vector<16x128xf32>
    %cst_37 = arith.constant dense<0.000000e+00> : vector<16xf32>
    %97 = vector.multi_reduction <add>, %96, %cst_37 [1] : vector<16x128xf32> to vector<16xf32>
    %98 = vector.shape_cast %97 : vector<16xf32> to vector<16x1xf32>
    %cst_38 = arith.constant 1.280000e+02 : f32
    %99 = vector.broadcast %cst_38 : f32 to vector<16x1xf32>
    %100 = arith.divf %98, %99 : vector<16x1xf32>
    %101 = vector.broadcast %93 : vector<16x1xf32> to vector<16x128xf32>
    %102 = arith.subf %89, %101 : vector<16x128xf32>
    %cst_39 = arith.constant 9.99999974E-6 : f32
    %103 = vector.broadcast %cst_39 : f32 to vector<16x1xf32>
    %104 = arith.addf %100, %103 : vector<16x1xf32>
    %105 = math.rsqrt %104 : vector<16x1xf32>
    %106 = vector.broadcast %105 : vector<16x1xf32> to vector<16x128xf32>
    %107 = arith.mulf %102, %106 : vector<16x128xf32>
    %108 = vector.broadcast %11 : vector<1x128xf32> to vector<16x128xf32>
    %109 = arith.mulf %107, %108 : vector<16x128xf32>
    %110 = vector.broadcast %12 : vector<1x128xf32> to vector<16x128xf32>
    %111 = arith.addf %109, %110 : vector<16x128xf32>
    %c0_40 = arith.constant 0 : index
    %c0_41 = arith.constant 0 : index
    %112 = vector.load %arg13[%c0_40, %c0_41] : memref<16x128xf32, #tpu.memory_space<vmem>>, vector<16x128xf32>
    tpu.vector_store %arg13[%c0_40, %c0_41], %111 {strides = array<i32>} : memref<16x128xf32, #tpu.memory_space<vmem>>, vector<16x128xf32>,
    %c1_i32 = arith.constant 1 : i32
    %113 = arith.cmpi eq, %arg1, %c1_i32 : i32
    %114 = arith.extui %113 : i1 to i32
    %c0_i32_42 = arith.constant 0 : i32
    %115 = arith.cmpi ne, %114, %c0_i32_42 : i32
    scf.if %115 {
      %116 = arith.truncf %111 : vector<16x128xf32> to vector<16x128xbf16>
      %c0_43 = arith.constant 0 : index
      %c0_44 = arith.constant 0 : index
      %117 = vector.load %arg10[%c0_43, %c0_44] : memref<128x256xbf16, #tpu.memory_space<vmem>>, vector<128x256xbf16>
      %cst_45 = arith.constant dense<0.000000e+00> : vector<16x256xf32>
      %118 = tpu.matmul %116, %117, %cst_45 {dimension_numbers = #tpu.dot_dimension_numbers<[1], [0], [0], [1], [0, 0, 1, 1], [], []>} : vector<16x128xbf16>, vector<128x256xbf16>, vector<16x256xf32> -> vector<16x256xf32>
      %c0_46 = arith.constant 0 : index
      %c0_47 = arith.constant 0 : index
      %119 = vector.load %arg11[%c0_46, %c0_47] : memref<1x256xf32, #tpu.memory_space<vmem>>, vector<1x256xf32>
      %120 = vector.broadcast %119 : vector<1x256xf32> to vector<16x256xf32>
      %121 = arith.addf %118, %120 : vector<16x256xf32>
      %c0_48 = arith.constant 0 : index
      %c0_49 = arith.constant 0 : index
      %c0_50 = arith.constant 0 : index
      %122 = vector.load %arg12[%c0_48, %c0_49, %c0_50] : memref<1x16x256xf32, #tpu.memory_space<vmem>>, vector<1x16x256xf32>
      %123 = vector.shape_cast %122 : vector<1x16x256xf32> to vector<16x256xf32>
      %124 = vector.shape_cast %121 : vector<16x256xf32> to vector<1x16x256xf32>
      tpu.vector_store %arg12[%c0_48, %c0_49, %c0_50], %124 {strides = array<i32>} : memref<1x16x256xf32, #tpu.memory_space<vmem>>, vector<1x16x256xf32>,
    } else {
    }
    return
  }
  func.func @transform_0(%arg0: i32, %arg1: i32) -> (i32, i32, i32) {
    %c0_i32 = arith.constant 0 : i32
    %c0_i32_0 = arith.constant 0 : i32
    %c0_i32_1 = arith.constant 0 : i32
    return %arg0, %c0_i32, %c0_i32_0 : i32, i32, i32
  }
  func.func @transform_1(%arg0: i32, %arg1: i32) -> (i32, i32) {
    %c0_i32 = arith.constant 0 : i32
    %c0_i32_0 = arith.constant 0 : i32
    %c0_i32_1 = arith.constant 0 : i32
    return %c0_i32, %c0_i32_0 : i32, i32
  }
  func.func @transform_2(%arg0: i32, %arg1: i32) -> (i32, i32) {
    %c0_i32 = arith.constant 0 : i32
    %c0_i32_0 = arith.constant 0 : i32
    %c0_i32_1 = arith.constant 0 : i32
    return %c0_i32, %c0_i32_0 : i32, i32
  }
  func.func @transform_3(%arg0: i32, %arg1: i32) -> (i32, i32, i32, i32) {
    %c0_i32 = arith.constant 0 : i32
    %c0_i32_0 = arith.constant 0 : i32
    %c0_i32_1 = arith.constant 0 : i32
    %c0_i32_2 = arith.constant 0 : i32
    return %arg1, %c0_i32, %c0_i32_0, %c0_i32_1 : i32, i32, i32, i32
  }
  func.func @transform_4(%arg0: i32, %arg1: i32) -> (i32, i32, i32, i32) {
    %c0_i32 = arith.constant 0 : i32
    %c0_i32_0 = arith.constant 0 : i32
    %c0_i32_1 = arith.constant 0 : i32
    %c0_i32_2 = arith.constant 0 : i32
    return %arg1, %c0_i32, %c0_i32_0, %c0_i32_1 : i32, i32, i32, i32
  }
  func.func @transform_5(%arg0: i32, %arg1: i32) -> (i32, i32, i32) {
    %c0_i32 = arith.constant 0 : i32
    %c0_i32_0 = arith.constant 0 : i32
    %c0_i32_1 = arith.constant 0 : i32
    return %arg1, %c0_i32, %c0_i32_0 : i32, i32, i32
  }
  func.func @transform_6(%arg0: i32, %arg1: i32) -> (i32, i32, i32) {
    %c0_i32 = arith.constant 0 : i32
    %c0_i32_0 = arith.constant 0 : i32
    %c0_i32_1 = arith.constant 0 : i32
    return %arg1, %c0_i32, %c0_i32_0 : i32, i32, i32
  }
  func.func @transform_7(%arg0: i32, %arg1: i32) -> (i32, i32, i32) {
    %c0_i32 = arith.constant 0 : i32
    %c0_i32_0 = arith.constant 0 : i32
    %c0_i32_1 = arith.constant 0 : i32
    return %arg1, %c0_i32, %c0_i32_0 : i32, i32, i32
  }
  func.func @transform_8(%arg0: i32, %arg1: i32) -> (i32, i32) {
    %c0_i32 = arith.constant 0 : i32
    %c0_i32_0 = arith.constant 0 : i32
    %c0_i32_1 = arith.constant 0 : i32
    return %c0_i32, %c0_i32_0 : i32, i32
  }
  func.func @transform_9(%arg0: i32, %arg1: i32) -> (i32, i32) {
    %c0_i32 = arith.constant 0 : i32
    %c0_i32_0 = arith.constant 0 : i32
    %c0_i32_1 = arith.constant 0 : i32
    return %c0_i32, %c0_i32_0 : i32, i32
  }
  func.func @transform_10(%arg0: i32, %arg1: i32) -> (i32, i32, i32) {
    %c0_i32 = arith.constant 0 : i32
    %c0_i32_0 = arith.constant 0 : i32
    %c0_i32_1 = arith.constant 0 : i32
    return %arg0, %c0_i32, %c0_i32_0 : i32, i32, i32
  }
}

</mosaic_0001>

<bundles_post_ra>
// kernel: gpt_forward.1
= control target key start
LH: loop header
LB: loop body
LE: loop exit
PB: predicated region body
PF: predicated region fallthrough
CT: control target
= control target key end

     0   :  { %s5714_s0 = inlined_call_operand.vmem [shape: s32[2,16,1], index: 0, kind: input, shape index: {}]   ;;  %s5715_s1 = inlined_call_operand.vmem [shape: f32[256,128], index: 1, kind: input, shape index: {}]   ;;  %s5716_s2 = inlined_call_operand.vmem [shape: f32[16,128], index: 2, kind: input, shape index: {}]   ;;  %s5717_s3 = inlined_call_operand.vmem [shape: bf16[2,12,128,32], index: 3, kind: input, shape index: {}]   ;;  %s5718_s4 = inlined_call_operand.vmem [shape: bf16[2,4,32,128], index: 4, kind: input, shape index: {}]   ;;  %s5719_s5 = inlined_call_operand.vmem [shape: bf16[2,128,512], index: 5, kind: input, shape index: {}]   ;;  %s5720_s6 = inlined_call_operand.vmem [shape: bf16[2,512,128], index: 6, kind: input, shape index: {}]   ;;  %s5721_s7 = inlined_call_operand.vmem [shape: f32[2,8,512], index: 7, kind: input, shape index: {}]   ;;  %s5722_s8 = inlined_call_operand.vmem [shape: bf16[128,256], index: 8, kind: input, shape index: {}]   ;;  %s5723_s9 = inlined_call_operand.vmem [shape: f32[1,256], index: 9, kind: input, shape index: {}]   ;;  %s5724_s10 = inlined_call_operand.hbm [shape: f32[2,16,256], index: 10, kind: output, shape index: {}]  }
   0x1   :  { %5738 = sst [smem:[#allocation17_spill]] %s5714_s0 }
   0x2   :  { %5739 = sst [smem:[#allocation18_spill]] %s5724_s10 }
   0x3   :  { %15 = vsyncpa [#allocation4], 0 }
   0x4   :  { %17 = vsyncpa [#allocation4 + $0x1], 0  ;;  %s4671_s13 = smov 0   ;;  %s4673_s14 = smov 0  }
   0x5   :  { %s4675_s15 = smov 0   ;;  %s4677_s16 = smov 0  }
   0x6   :  { %s4679_s17 = smov 0   ;;  %s4681_s18 = smov 0  }
   0x7   :  { %s4683_s19 = smov 0   ;;  %s4685_s20 = smov 0  }
   0x8 LB: > { %5740 = sst [smem:[#allocation6_spill]] %s4581_s13  ;;  %s3368_s21 = sadd.s32 4294967295, %s4609_s20   ;;  %s4609_s20 = sphi %s4685_s20, %s23_s20   ;;  %s4605_s19 = sphi %s4683_s19, %s5783_s19   ;;  %s4601_s18 = sphi %s4681_s18, %s5782_s18   ;;  %s4597_s17 = sphi %s4679_s17, %s5781_s17   ;;  %s4593_s16 = sphi %s4677_s16, %s5780_s16   ;;  %s4589_s15 = sphi %s4675_s15, %s5779_s15   ;;  %s4585_s14 = sphi %s4673_s14, %s5778_s14   ;;  %s4581_s13 = sphi %s4671_s13, %s5777_s13  }
   0x9   : > { %5741 = sst [smem:[#allocation7_spill]] %s4585_s14  ;;  %s3369_s22 = sadd.s32 4294967294, %s4609_s20  }
   0xa   : > { %5742 = sst [smem:[#allocation8_spill]] %s4589_s15  ;;  %s32_s23 = sadd.s32 1, %s4601_s18 }
   0xb   : > { %5743 = sst [smem:[#allocation9_spill]] %s4601_s18  ;;  %p33_p0 = scmp.ge.s32.totalorder %s32_s23, 2 }
   0xc   : > { %5744 = sst [smem:[#allocation10_spill]] %s4605_s19  ;;  %s35_s24 = sadd.s32 1, %s4605_s19 }
   0xd   : > { %5745 = sst [smem:[#allocation11_spill]] %s4609_s20  ;;  %p292_p1 = scmp.ne.s32.totalorder %s4589_s15, %s4585_s14 }
   0xe   : > { %p293_p2 = scmp.eq.s32.totalorder %s3368_s21, 3  ;;  %s5785_s23 = smov (%p33_p0, %s32_s23), 0 }
   0xf   : > { %5746 = sst [smem:[#allocation12_spill]] %s5785_s23  ;;  %s5787_s24 = smov (!%p33_p0, %s35_s24), %s4605_s19 }
  0x10   : > { %p4720_p3 = por %p293_p2, %p292_p1  ;;  %p298_p4 = scmp.ne.s32.totalorder %s4585_s14, %s4581_s13 }
  0x11   : > { %p37_p5 = scmp.ge.s32.totalorder %s5787_s24, 2  ;;  %p299_p6 = scmp.eq.s32.totalorder %s3369_s22, 3 }
  0x12   : > { %s5747_s25 = scalar_select %p4720_p3, 1, 0 }
  0x13   : > { %p3372_p7 = scmp.ge.s32.totalorder %s4609_s20, 1  ;;  %p377_p8 = scmp.lt.s32.totalorder %s4609_s20, 5 }
  0x14   : > { %5748 = sst [smem:[#allocation13_spill]] %s5747_s25  ;;  %s5789_s24 = smov (%p37_p5, %s5787_s24), 0 }
  0x15   : > { %5749 = sst [smem:[#allocation14_spill]] %s5789_s24  ;;  %p4730_p9 = por %p299_p6, %p298_p4 }
  0x16   : > { %p378_p10 = pnand %p3372_p7, %p377_p8  ;;  %s279_s27 = ssub.s32 %s4605_s19, %s5789_s24 }
  0x17   : > { %s5750_s26 = scalar_select %p4730_p9, 1, 0 }
  0x18   : > { %s282_s28 = sadd.s32 1, %s4589_s15  ;;  %p280_p11 = scmp.eq.s32.totalorder %s279_s27, 0 }
  0x19   : > { %5751 = sst [smem:[#allocation15_spill]] %s5750_s26  ;;  %381 = sbr.rel (%p378_p10) target bundleno = 2327 (0x917), region = 60 }
  0x1a   : > { %s4738_s29 = scalar_select %p280_p11, %s4589_s15, %s282_s28  }
  0x1b   : > { %s5733_s30 = sand.u32 (!%p378_p10), 1, %s4585_s14   ;;  %p440_p12 = scmp.lt.s32.totalorder (!%p378_p10), %s4597_s17, 1 }
  0x1c   : > { %5752 = sst [smem:[#allocation16_spill]] %s4738_s29  ;;  %s3373_s11 = sshll.u32 (!%p378_p10), %s5733_s30, 5 }
  0x1d   : > { %p445_p13 = scmp.lt.s32.totalorder (!%p378_p10), %s4593_s16, 1  ;;  %s5753_s0 = sld [smem:[#allocation17_spill]] (!%p378_p10) }
  0x1e   : > { %s441_s12 = scalar_select %p440_p12, %s4597_s17, 1 }
  0x1f   : > { %s446_s21 = scalar_select %p445_p13, %s4593_s16, 1 }
  0x20   : > { %s4156_s22 = sshll.u32 %s441_s12, 4  ;;  %p3385_p0 = scmp.ne.s32.totalorder %s4593_s16, 0 }
  0x21   : > { %s4378_s28 = smul.u32 768, %s446_s21  ;;  %s4157_s19 = sshll.u32 %s446_s21, 6 }
  0x22   : > { %s4158_s18 = sshll.u32 %s446_s21, 8  ;;  %s4760_s30 = scalar_lea.vmem %s5718_s4, %s4157_s19 }
  0x23   : > { %s4750_s27 = scalar_lea.vmem %s5753_s0, %s4156_s22  ;;  %s4755_s26 = scalar_lea.vmem %s5717_s3, %s4378_s28 }
  0x24   : > { %s4765_s25 = scalar_lea.vmem %s5719_s5, %s4158_s18  ;;  %s4770_s22 = scalar_lea.vmem %s5720_s6, %s4158_s18 }
  0x25   : > { %s4160_s0 = sshll.u32 %s446_s21, 5  ;;  %s4777_s28 = scalar_lea.vmem [#allocation3], %s3373_s11 }
  0x26   : > { %s4775_s29 = scalar_lea.vmem %s5721_s7, %s4160_s0  ;;  %474 = sbr.rel (%p3385_p0) target bundleno = 300 (0x12c), region = 64 }
  0x2b   : > { %v479_v0 = vld [vmem:[%s4750_s27 + $0x8] sm:$0xff]  ;;  %v513_v1 = vld [vmem:[%s5715_s1 + $0x78] sm:$0xff]  ;;  %v4611_v2 = vmov 0   ;;  %v512_v4 = vld [vmem:[%s5715_s1 + $0x70] sm:$0xff]  ;;  %v475_v35 = vlaneseq  ;;  %v4612_v39 = vmov 1.0  }
  0x2c   : > { %4455 = vset.pattern.permute.xlu0 %v4611_v2  ;;  %4346 = vmatpush.msra.mxu2 %v513_v1  ;;  %v529_v3 = vld [vmem:[%s5715_s1 + $0xf8] sm:$0xff]  ;;  %v528_v5 = vld [vmem:[%s5715_s1 + $0xf0] sm:$0xff]  ;;  %v511_v6 = vld [vmem:[%s5715_s1 + $0x68] sm:$0xff] }
  0x2d   : > { %484 = vperm.xlu0 %4455, %v479_v0   ;;  %4362 = vmatpush.msra.mxu3 %v529_v3  ;;  %v527_v7 = vld [vmem:[%s5715_s1 + $0xe8] sm:$0xff]  ;;  %v510_v8 = vld [vmem:[%s5715_s1 + $0x60] sm:$0xff]  ;;  %v509_v10 = vld [vmem:[%s5715_s1 + $0x58] sm:$0xff]  ;;  %v476_v36 = vand.u32 127, %v475_v35 }
  0x2e   : > { %4347 = vmatpush.msra.mxu2 %v512_v4  ;;  %532 = vmatpush.msra.mxu0 %v513_v1  ;;  %v526_v9 = vld [vmem:[%s5715_s1 + $0xe0] sm:$0xff]  ;;  %v525_v12 = vld [vmem:[%s5715_s1 + $0xd8] sm:$0xff]  ;;  %v508_v13 = vld [vmem:[%s5715_s1 + $0x50] sm:$0xff] }
  0x2f   : > { %4363 = vmatpush.msra.mxu3 %v528_v5  ;;  %555 = vmatpush.msra.mxu1 %v529_v3  ;;  %v478_v11 = vld [vmem:[%s4750_s27] sm:$0xff]  ;;  %v524_v14 = vld [vmem:[%s5715_s1 + $0xd0] sm:$0xff]  ;;  %v507_v15 = vld [vmem:[%s5715_s1 + $0x48] sm:$0xff]  ;;  %v477_v37 = vadd.s32 128, %v476_v36 }
  0x30   : > { %4348 = vmatpush.msra.mxu2 %v511_v6  ;;  %533 = vmatpush.msra.mxu0 %v512_v4  ;;  %v523_v16 = vld [vmem:[%s5715_s1 + $0xc8] sm:$0xff]  ;;  %v506_v17 = vld [vmem:[%s5715_s1 + $0x40] sm:$0xff]  ;;  %v505_v19 = vld [vmem:[%s5715_s1 + $0x38] sm:$0xff] }
  0x31   : > { %4364 = vmatpush.msra.mxu3 %v527_v7  ;;  %556 = vmatpush.msra.mxu1 %v528_v5  ;;  %v522_v18 = vld [vmem:[%s5715_s1 + $0xc0] sm:$0xff]  ;;  %v521_v20 = vld [vmem:[%s5715_s1 + $0xb8] sm:$0xff]  ;;  %v504_v21 = vld [vmem:[%s5715_s1 + $0x30] sm:$0xff] }
  0x32   : > { %4349 = vmatpush.msra.mxu2 %v510_v8  ;;  %534 = vmatpush.msra.mxu0 %v511_v6  ;;  %v520_v22 = vld [vmem:[%s5715_s1 + $0xb0] sm:$0xff]  ;;  %v503_v23 = vld [vmem:[%s5715_s1 + $0x28] sm:$0xff]  ;;  %v502_v25 = vld [vmem:[%s5715_s1 + $0x20] sm:$0xff] }
  0x33   : > { %4365 = vmatpush.msra.mxu3 %v526_v9  ;;  %557 = vmatpush.msra.mxu1 %v527_v7  ;;  %v519_v24 = vld [vmem:[%s5715_s1 + $0xa8] sm:$0xff]  ;;  %v518_v26 = vld [vmem:[%s5715_s1 + $0xa0] sm:$0xff]  ;;  %v501_v27 = vld [vmem:[%s5715_s1 + $0x18] sm:$0xff] }
  0x34   : > { %4350 = vmatpush.msra.mxu2 %v509_v10  ;;  %535 = vmatpush.msra.mxu0 %v510_v8  ;;  %v517_v28 = vld [vmem:[%s5715_s1 + $0x98] sm:$0xff]  ;;  %v500_v29 = vld [vmem:[%s5715_s1 + $0x10] sm:$0xff]  ;;  %v499_v31 = vld [vmem:[%s5715_s1 + $0x8] sm:$0xff] }
  0x35   : > { %481 = vperm.xlu0 %4455, %v478_v11   ;;  %4366 = vmatpush.msra.mxu3 %v525_v12  ;;  %v516_v30 = vld [vmem:[%s5715_s1 + $0x90] sm:$0xff]  ;;  %v515_v32 = vld [vmem:[%s5715_s1 + $0x88] sm:$0xff]  ;;  %v498_v33 = vld [vmem:[%s5715_s1] sm:$0xff] }
  0x36   : > { %4351 = vmatpush.msra.mxu2 %v508_v13  ;;  %558 = vmatpush.msra.mxu1 %v526_v9  ;;  %v514_v34 = vld [vmem:[%s5715_s1 + $0x80] sm:$0xff]  ;;  %v531_v41 = vld [vmem:[%s5716_s2 + $0x8] sm:$0xff] }
  0x37   : > { %4367 = vmatpush.msra.mxu3 %v524_v14  ;;  %536 = vmatpush.msra.mxu0 %v509_v10  ;;  %v530_v43 = vld [vmem:[%s5716_s2] sm:$0xff] }
  0x38   : > { %4352 = vmatpush.msra.mxu2 %v507_v15  ;;  %559 = vmatpush.msra.mxu1 %v525_v12 }
  0x39   : > { %4368 = vmatpush.msra.mxu3 %v523_v16  ;;  %537 = vmatpush.msra.mxu0 %v508_v13 }
  0x3a   : > { %4353 = vmatpush.msra.mxu2 %v506_v17  ;;  %560 = vmatpush.msra.mxu1 %v524_v14 }
  0x3b   : > { %4369 = vmatpush.msra.mxu3 %v522_v18  ;;  %538 = vmatpush.msra.mxu0 %v507_v15 }
  0x3c   : > { %4354 = vmatpush.msra.mxu2 %v505_v19  ;;  %561 = vmatpush.msra.mxu1 %v523_v16 }
  0x3d   : > { %4370 = vmatpush.msra.mxu3 %v521_v20  ;;  %539 = vmatpush.msra.mxu0 %v506_v17 }
  0x3e   : > { %4355 = vmatpush.msra.mxu2 %v504_v21  ;;  %562 = vmatpush.msra.mxu1 %v522_v18 }
  0x3f   : > { %4371 = vmatpush.msra.mxu3 %v520_v22  ;;  %540 = vmatpush.msra.mxu0 %v505_v19 }
  0x40   : > { %4356 = vmatpush.msra.mxu2 %v503_v23  ;;  %563 = vmatpush.msra.mxu1 %v521_v20 }
  0x41   : > { %4372 = vmatpush.msra.mxu3 %v519_v24  ;;  %541 = vmatpush.msra.mxu0 %v504_v21 }
  0x42   : > { %4357 = vmatpush.msra.mxu2 %v502_v25  ;;  %564 = vmatpush.msra.mxu1 %v520_v22 }
  0x43   : > { %4373 = vmatpush.msra.mxu3 %v518_v26  ;;  %542 = vmatpush.msra.mxu0 %v503_v23 }
  0x44   : > { %4358 = vmatpush.msra.mxu2 %v501_v27  ;;  %565 = vmatpush.msra.mxu1 %v519_v24 }
  0x45   : > { %4374 = vmatpush.msra.mxu3 %v517_v28  ;;  %543 = vmatpush.msra.mxu0 %v502_v25 }
  0x46   : > { %4359 = vmatpush.msra.mxu2 %v500_v29  ;;  %566 = vmatpush.msra.mxu1 %v518_v26 }
  0x47   : > { %4375 = vmatpush.msra.mxu3 %v516_v30  ;;  %544 = vmatpush.msra.mxu0 %v501_v27 }
  0x48   : > { %4360 = vmatpush.msra.mxu2 %v499_v31  ;;  %567 = vmatpush.msra.mxu1 %v517_v28 }
  0x49   : > { %4376 = vmatpush.msra.mxu3 %v515_v32  ;;  %545 = vmatpush.msra.mxu0 %v500_v29 }
  0x4a   : > { %568 = vmatpush.msra.mxu1 %v516_v30  ;;  %4361 = vmatpush.msra.mxu2 %v498_v33 }
  0x4b   : > { %546 = vmatpush.msra.mxu0 %v499_v31  ;;  %4377 = vmatpush.msra.mxu3 %v514_v34 }
  0x4c   : > { %569 = vmatpush.msra.mxu1 %v515_v32 }
  0x4d   : > { %547 = vmatpush.msra.mxu0 %v498_v33 }
  0x4e   : > { %570 = vmatpush.msra.mxu1 %v514_v34 }
  0x9f   : > { %v485_v38 = vpop.permute.xlu0 %484 }
  0xa0   : > { %vm488_vm0 = vcmp.eq.s32.totalorder %v476_v36, %v485_v38  ;;  %vm489_vm1 = vcmp.eq.s32.totalorder %v477_v37, %v485_v38 }
  0xa1   : > { %3391 = vmatmul.msk.f32.vlgmr.msra.gmra.mxu2 %vm488_vm0, %v4612_v39  ;;  %3393 = vmatmul.msk.f32.vlgmr.msra.gmra.mxu3 %vm489_vm1, %v4612_v39 }
  0xa7   : > { %v482_v40 = vpop.permute.xlu0 %481 }
  0xa8   : > { %vm486_vm2 = vcmp.eq.s32.totalorder %v476_v36, %v482_v40  ;;  %vm487_vm3 = vcmp.eq.s32.totalorder %v477_v37, %v482_v40 }
  0xa9   : > { %3390 = vmatmul.msk.f32.vlgmr.msra.gmra.mxu0 %vm486_vm2, %v4612_v39  ;;  %3392 = vmatmul.msk.f32.vlgmr.msra.gmra.mxu1 %vm487_vm3, %v4612_v39 }
 0x124   : > { %v552_v42 = vpop.f32.mrf.mxu2  ;;  %v575_v45 = vpop.f32.mrf.mxu3 }
 0x125   : > { %v553_v44 = vadd.f32 %v552_v42, %v531_v41 }
 0x126   : > { %v549_v46 = vpop.f32.mrf.mxu0  ;;  %v572_v49 = vpop.f32.mrf.mxu1 }
 0x127   : > { %v576_v47 = vadd.f32 %v575_v45, %v553_v44  ;;  %v550_v48 = vadd.f32 %v549_v46, %v530_v43 }
 0x129   : > { %579 = vst [vmem:[#allocation2 + $0x8] sm:$0xff] %v576_v47  ;;  %v573_v50 = vadd.f32 %v572_v49, %v550_v48 }
 0x12b   : > { %578 = vst [vmem:[#allocation2] sm:$0xff] %v573_v50 }
 0x12c PF: > { %v4168_v51 = vld [vmem:[%s4755_s26 + $0x38] sm:$0xff]  ;;  %v4167_v55 = vld [vmem:[%s4755_s26 + $0x30] sm:$0xff]  ;;  %v4166_v59 = vld [vmem:[%s4755_s26 + $0x28] sm:$0xff]  ;;  %vm1564_vm4 = vcmask 261120   ;;  %vm1675_vm5 = vcmask 130048   ;;  %p4086_p1 = scmp.ne.s32.totalorder %s4593_s16, 1 }
 0x12d   : > { %v4176_v52 = vld [vmem:[%s4755_s26 + $0x78] sm:$0xff]  ;;  %834 = vmatpush.bf16.msra.mxu0 %v4168_v51  ;;  %v4175_v56 = vld [vmem:[%s4755_s26 + $0x70] sm:$0xff]  ;;  %v4174_v60 = vld [vmem:[%s4755_s26 + $0x68] sm:$0xff] }
 0x12e   : > { %v4184_v53 = vld [vmem:[%s4755_s26 + $0xb8] sm:$0xff]  ;;  %896 = vmatpush.bf16.msra.mxu1 %v4176_v52  ;;  %v4183_v57 = vld [vmem:[%s4755_s26 + $0xb0] sm:$0xff]  ;;  %v4182_v61 = vld [vmem:[%s4755_s26 + $0xa8] sm:$0xff] }
 0x12f   : > { %v4192_v54 = vld [vmem:[%s4755_s26 + $0xf8] sm:$0xff]  ;;  %958 = vmatpush.bf16.msra.mxu2 %v4184_v53  ;;  %v4191_v58 = vld [vmem:[%s4755_s26 + $0xf0] sm:$0xff]  ;;  %v4190_v62 = vld [vmem:[%s4755_s26 + $0xe8] sm:$0xff] }
 0x130   : > { %1020 = vmatpush.bf16.msra.mxu3 %v4192_v54  ;;  %v4165_v63 = vld [vmem:[%s4755_s26 + $0x20] sm:$0xff]  ;;  %v4164_v3 = vld [vmem:[%s4755_s26 + $0x18] sm:$0xff]  ;;  %v4163_v7 = vld [vmem:[%s4755_s26 + $0x10] sm:$0xff] }
 0x131   : > { %835 = vmatpush.bf16.msra.mxu0 %v4167_v55  ;;  %v4173_v0 = vld [vmem:[%s4755_s26 + $0x60] sm:$0xff]  ;;  %v4172_v4 = vld [vmem:[%s4755_s26 + $0x58] sm:$0xff]  ;;  %v4171_v8 = vld [vmem:[%s4755_s26 + $0x50] sm:$0xff] }
 0x132   : > { %897 = vmatpush.bf16.msra.mxu1 %v4175_v56  ;;  %v4181_v1 = vld [vmem:[%s4755_s26 + $0xa0] sm:$0xff]  ;;  %v4180_v5 = vld [vmem:[%s4755_s26 + $0x98] sm:$0xff]  ;;  %v4179_v9 = vld [vmem:[%s4755_s26 + $0x90] sm:$0xff] }
 0x133   : > { %959 = vmatpush.bf16.msra.mxu2 %v4183_v57  ;;  %v4189_v2 = vld [vmem:[%s4755_s26 + $0xe0] sm:$0xff]  ;;  %v4188_v6 = vld [vmem:[%s4755_s26 + $0xd8] sm:$0xff]  ;;  %v4187_v10 = vld [vmem:[%s4755_s26 + $0xd0] sm:$0xff] }
 0x134   : > { %1021 = vmatpush.bf16.msra.mxu3 %v4191_v58  ;;  %v4908_v11 = vld [vmem:[#allocation2] sm:$0xff]  ;;  %v4910_v12 = vld [vmem:[#allocation2 + $0x8] sm:$0xff]  ;;  %v4200_v25 = vld [vmem:[%s4755_s26 + $0x138] sm:$0xff] }
 0x135   : > { %836 = vmatpush.bf16.msra.mxu0 %v4166_v59  ;;  %v4162_v13 = vld [vmem:[%s4755_s26 + $0x8] sm:$0xff]  ;;  %v586_v15 = vpack.c.bf16 %v4908_v11, %v4908_v11  ;;  %v587_v16 = vpack.c.bf16 %v4910_v12, %v4910_v12  ;;  %v4161_v19 = vld [vmem:[%s4755_s26] sm:$0xff]  ;;  %v4208_v26 = vld [vmem:[%s4755_s26 + $0x178] sm:$0xff] }
 0x136   : > { %898 = vmatpush.bf16.msra.mxu1 %v4174_v60  ;;  %v4170_v14 = vld [vmem:[%s4755_s26 + $0x48] sm:$0xff]  ;;  %v4169_v20 = vld [vmem:[%s4755_s26 + $0x40] sm:$0xff]  ;;  %v4216_v27 = vld [vmem:[%s4755_s26 + $0x1b8] sm:$0xff] }
 0x137   : > { %960 = vmatpush.bf16.msra.mxu2 %v4182_v61  ;;  %v4178_v17 = vld [vmem:[%s4755_s26 + $0x88] sm:$0xff]  ;;  %v782_v21 = vunpack.c.l.b16 %v586_v15  ;;  %v783_v22 = vunpack.c.l.b16 %v587_v16  ;;  %v4177_v23 = vld [vmem:[%s4755_s26 + $0x80] sm:$0xff]  ;;  %v4224_v28 = vld [vmem:[%s4755_s26 + $0x1f8] sm:$0xff] }
 0x138   : > { %1022 = vmatpush.bf16.msra.mxu3 %v4190_v62  ;;  %v4186_v18 = vld [vmem:[%s4755_s26 + $0xc8] sm:$0xff]  ;;  %v4185_v24 = vld [vmem:[%s4755_s26 + $0xc0] sm:$0xff]  ;;  %v4199_v30 = vld [vmem:[%s4755_s26 + $0x130] sm:$0xff] }
 0x139   : > { %837 = vmatpush.bf16.msra.mxu0 %v4165_v63  ;;  %v4928_v29 = vpack.c.b16 %v783_v22, %v782_v21  ;;  %v4207_v31 = vld [vmem:[%s4755_s26 + $0x170] sm:$0xff]  ;;  %v4198_v34 = vld [vmem:[%s4755_s26 + $0x128] sm:$0xff]  ;;  %v4197_v38 = vld [vmem:[%s4755_s26 + $0x120] sm:$0xff] }
 0x13a   : > { %899 = vmatpush.bf16.msra.mxu1 %v4173_v0  ;;  %v4215_v32 = vld [vmem:[%s4755_s26 + $0x1b0] sm:$0xff]  ;;  %v4206_v35 = vld [vmem:[%s4755_s26 + $0x168] sm:$0xff]  ;;  %v4205_v39 = vld [vmem:[%s4755_s26 + $0x160] sm:$0xff] }
 0x13b   : > { %961 = vmatpush.bf16.msra.mxu2 %v4181_v1  ;;  %v4223_v33 = vld [vmem:[%s4755_s26 + $0x1f0] sm:$0xff]  ;;  %v4214_v36 = vld [vmem:[%s4755_s26 + $0x1a8] sm:$0xff]  ;;  %v4213_v40 = vld [vmem:[%s4755_s26 + $0x1a0] sm:$0xff] }
 0x13c   : > { %1023 = vmatpush.bf16.msra.mxu3 %v4189_v2  ;;  %v4222_v37 = vld [vmem:[%s4755_s26 + $0x1e8] sm:$0xff]  ;;  %v4221_v41 = vld [vmem:[%s4755_s26 + $0x1e0] sm:$0xff]  ;;  %v4196_v42 = vld [vmem:[%s4755_s26 + $0x118] sm:$0xff] }
 0x13d   : > { %838 = vmatpush.bf16.msra.mxu0 %v4164_v3  ;;  %v4204_v43 = vld [vmem:[%s4755_s26 + $0x158] sm:$0xff]  ;;  %v4195_v46 = vld [vmem:[%s4755_s26 + $0x110] sm:$0xff]  ;;  %v4194_v50 = vld [vmem:[%s4755_s26 + $0x108] sm:$0xff] }
 0x13e   : > { %900 = vmatpush.bf16.msra.mxu1 %v4172_v4  ;;  %v4212_v44 = vld [vmem:[%s4755_s26 + $0x198] sm:$0xff]  ;;  %v4203_v47 = vld [vmem:[%s4755_s26 + $0x150] sm:$0xff]  ;;  %v4202_v51 = vld [vmem:[%s4755_s26 + $0x148] sm:$0xff] }
 0x13f   : > { %962 = vmatpush.bf16.msra.mxu2 %v4180_v5  ;;  %v4220_v45 = vld [vmem:[%s4755_s26 + $0x1d8] sm:$0xff]  ;;  %v4211_v48 = vld [vmem:[%s4755_s26 + $0x190] sm:$0xff]  ;;  %v4210_v52 = vld [vmem:[%s4755_s26 + $0x188] sm:$0xff] }
 0x140   : > { %1024 = vmatpush.bf16.msra.mxu3 %v4188_v6  ;;  %v4219_v49 = vld [vmem:[%s4755_s26 + $0x1d0] sm:$0xff]  ;;  %v4218_v53 = vld [vmem:[%s4755_s26 + $0x1c8] sm:$0xff]  ;;  %v4193_v54 = vld [vmem:[%s4755_s26 + $0x100] sm:$0xff] }
 0x141   : > { %839 = vmatpush.bf16.msra.mxu0 %v4163_v7  ;;  %v4201_v55 = vld [vmem:[%s4755_s26 + $0x140] sm:$0xff]  ;;  %v4232_v58 = vld [vmem:[%s4755_s26 + $0x238] sm:$0xff]  ;;  %v4231_v60 = vld [vmem:[%s4755_s26 + $0x230] sm:$0xff] }
 0x142   : > { %901 = vmatpush.bf16.msra.mxu1 %v4171_v8  ;;  %v4209_v56 = vld [vmem:[%s4755_s26 + $0x180] sm:$0xff]  ;;  %v4240_v59 = vld [vmem:[%s4755_s26 + $0x278] sm:$0xff]  ;;  %v4239_v61 = vld [vmem:[%s4755_s26 + $0x270] sm:$0xff] }
 0x143   : > { %963 = vmatpush.bf16.msra.mxu2 %v4179_v9  ;;  %v4217_v57 = vld [vmem:[%s4755_s26 + $0x1c0] sm:$0xff]  ;;  %v4248_v62 = vld [vmem:[%s4755_s26 + $0x2b8] sm:$0xff]  ;;  %v4247_v63 = vld [vmem:[%s4755_s26 + $0x2b0] sm:$0xff] }
 0x144   : > { %1025 = vmatpush.bf16.msra.mxu3 %v4187_v10  ;;  %v4256_v0 = vld [vmem:[%s4755_s26 + $0x2f8] sm:$0xff]  ;;  %v4230_v1 = vld [vmem:[%s4755_s26 + $0x228] sm:$0xff]  ;;  %v4255_v3 = vld [vmem:[%s4755_s26 + $0x2f0] sm:$0xff] }
 0x145   : > { %840 = vmatpush.bf16.msra.mxu0 %v4162_v13  ;;  %v4238_v2 = vld [vmem:[%s4755_s26 + $0x268] sm:$0xff]  ;;  %v4229_v4 = vld [vmem:[%s4755_s26 + $0x220] sm:$0xff]  ;;  %v4244_v9 = vld [vmem:[%s4755_s26 + $0x298] sm:$0xff] }
 0x146   : > { %902 = vmatpush.bf16.msra.mxu1 %v4170_v14  ;;  %v4246_v5 = vld [vmem:[%s4755_s26 + $0x2a8] sm:$0xff]  ;;  %v4237_v6 = vld [vmem:[%s4755_s26 + $0x260] sm:$0xff]  ;;  %v4228_v10 = vld [vmem:[%s4755_s26 + $0x218] sm:$0xff] }
 0x147   : > { %964 = vmatpush.bf16.msra.mxu2 %v4178_v17  ;;  %v4245_v7 = vld [vmem:[%s4755_s26 + $0x2a0] sm:$0xff]  ;;  %v4254_v8 = vld [vmem:[%s4755_s26 + $0x2e8] sm:$0xff]  ;;  %v4236_v13 = vld [vmem:[%s4755_s26 + $0x258] sm:$0xff] }
 0x148   : > { %1026 = vmatpush.bf16.msra.mxu3 %v4186_v18  ;;  %v4253_v14 = vld [vmem:[%s4755_s26 + $0x2e0] sm:$0xff]  ;;  %v4227_v15 = vld [vmem:[%s4755_s26 + $0x210] sm:$0xff]  ;;  %v4252_v18 = vld [vmem:[%s4755_s26 + $0x2d8] sm:$0xff] }
 0x149   : > { %841 = vmatpush.bf16.msra.mxu0 %v4161_v19  ;;  %v4235_v16 = vld [vmem:[%s4755_s26 + $0x250] sm:$0xff]  ;;  %v4242_v19 = vld [vmem:[%s4755_s26 + $0x288] sm:$0xff] }
 0x14a   : > { %903 = vmatpush.bf16.msra.mxu1 %v4169_v20  ;;  %v4243_v17 = vld [vmem:[%s4755_s26 + $0x290] sm:$0xff]  ;;  %v4226_v20 = vld [vmem:[%s4755_s26 + $0x208] sm:$0xff] }
 0x14b   : > { %965 = vmatpush.bf16.msra.mxu2 %v4177_v23  ;;  %v4234_v21 = vld [vmem:[%s4755_s26 + $0x248] sm:$0xff]  ;;  %v4251_v22 = vld [vmem:[%s4755_s26 + $0x2d0] sm:$0xff]  ;;  %v4241_v23 = vld [vmem:[%s4755_s26 + $0x280] sm:$0xff] }
 0x14c   : > { %1027 = vmatpush.bf16.msra.mxu3 %v4185_v24  ;;  %842 = vmatmul.bf16.vlgmr.msra.gmra.mxu0 %v4928_v29  ;;  %v4225_v24 = vld [vmem:[%s4755_s26 + $0x200] sm:$0xff] }
 0x14d   : > { %1082 = vmatpush.bf16.msrb.mxu0 %v4200_v25  ;;  %904 = vmatmul.bf16.vlgmr.msra.gmra.mxu1 %v4928_v29  ;;  %v4233_v25 = vld [vmem:[%s4755_s26 + $0x240] sm:$0xff] }
 0x14e   : > { %1144 = vmatpush.bf16.msrb.mxu1 %v4208_v26  ;;  %966 = vmatmul.bf16.vlgmr.msra.gmra.mxu2 %v4928_v29  ;;  %v4250_v26 = vld [vmem:[%s4755_s26 + $0x2c8] sm:$0xff] }
 0x14f   : > { %1206 = vmatpush.bf16.msrb.mxu2 %v4216_v27  ;;  %1028 = vmatmul.bf16.vlgmr.msra.gmra.mxu3 %v4928_v29  ;;  %v4249_v27 = vld [vmem:[%s4755_s26 + $0x2c0] sm:$0xff] }
 0x150   : > { %1268 = vmatpush.bf16.msrb.mxu3 %v4224_v28 }
 0x151   : > { %1083 = vmatpush.bf16.msrb.mxu0 %v4199_v30 }
 0x152   : > { %1145 = vmatpush.bf16.msrb.mxu1 %v4207_v31 }
 0x153   : > { %1207 = vmatpush.bf16.msrb.mxu2 %v4215_v32 }
 0x154   : > { %1269 = vmatpush.bf16.msrb.mxu3 %v4223_v33 }
 0x155   : > { %1084 = vmatpush.bf16.msrb.mxu0 %v4198_v34 }
 0x156   : > { %1146 = vmatpush.bf16.msrb.mxu1 %v4206_v35 }
 0x157   : > { %1208 = vmatpush.bf16.msrb.mxu2 %v4214_v36 }
 0x158   : > { %1270 = vmatpush.bf16.msrb.mxu3 %v4222_v37 }
 0x159   : > { %1085 = vmatpush.bf16.msrb.mxu0 %v4197_v38 }
 0x15a   : > { %1147 = vmatpush.bf16.msrb.mxu1 %v4205_v39 }
 0x15b   : > { %1209 = vmatpush.bf16.msrb.mxu2 %v4213_v40 }
 0x15c   : > { %1271 = vmatpush.bf16.msrb.mxu3 %v4221_v41 }
 0x15d   : > { %1086 = vmatpush.bf16.msrb.mxu0 %v4196_v42 }
 0x15e   : > { %1148 = vmatpush.bf16.msrb.mxu1 %v4204_v43 }
 0x15f   : > { %1210 = vmatpush.bf16.msrb.mxu2 %v4212_v44 }
 0x160   : > { %1272 = vmatpush.bf16.msrb.mxu3 %v4220_v45 }
 0x161   : > { %1087 = vmatpush.bf16.msrb.mxu0 %v4195_v46 }
 0x162   : > { %1149 = vmatpush.bf16.msrb.mxu1 %v4203_v47 }
 0x163   : > { %1211 = vmatpush.bf16.msrb.mxu2 %v4211_v48 }
 0x164   : > { %1273 = vmatpush.bf16.msrb.mxu3 %v4219_v49 }
 0x165   : > { %1088 = vmatpush.bf16.msrb.mxu0 %v4194_v50 }
 0x166   : > { %1150 = vmatpush.bf16.msrb.mxu1 %v4202_v51 }
 0x167   : > { %1212 = vmatpush.bf16.msrb.mxu2 %v4210_v52 }
 0x168   : > { %1274 = vmatpush.bf16.msrb.mxu3 %v4218_v53 }
 0x169   : > { %1089 = vmatpush.bf16.msrb.mxu0 %v4193_v54 }
 0x16a   : > { %1151 = vmatpush.bf16.msrb.mxu1 %v4201_v55 }
 0x16b   : > { %1213 = vmatpush.bf16.msrb.mxu2 %v4209_v56 }
 0x16c   : > { %1275 = vmatpush.bf16.msrb.mxu3 %v4217_v57  ;;  %1090 = vmatmul.bf16.vlgmr.msrb.gmra.mxu0 %v4928_v29 }
 0x16d   : > { %1330 = vmatpush.bf16.msra.mxu0 %v4232_v58  ;;  %1152 = vmatmul.bf16.vlgmr.msrb.gmra.mxu1 %v4928_v29 }
 0x16e   : > { %1392 = vmatpush.bf16.msra.mxu1 %v4240_v59  ;;  %1214 = vmatmul.bf16.vlgmr.msrb.gmra.mxu2 %v4928_v29 }
 0x16f   : > { %1276 = vmatmul.bf16.vlgmr.msrb.gmra.mxu3 %v4928_v29  ;;  %1454 = vmatpush.bf16.msra.mxu2 %v4248_v62 }
 0x170   : > { %1516 = vmatpush.bf16.msra.mxu3 %v4256_v0 }
 0x171   : > { %1331 = vmatpush.bf16.msra.mxu0 %v4231_v60 }
 0x172   : > { %1393 = vmatpush.bf16.msra.mxu1 %v4239_v61 }
 0x173   : > { %1455 = vmatpush.bf16.msra.mxu2 %v4247_v63 }
 0x174   : > { %1517 = vmatpush.bf16.msra.mxu3 %v4255_v3 }
 0x175   : > { %1332 = vmatpush.bf16.msra.mxu0 %v4230_v1 }
 0x176   : > { %1394 = vmatpush.bf16.msra.mxu1 %v4238_v2 }
 0x177   : > { %1456 = vmatpush.bf16.msra.mxu2 %v4246_v5 }
 0x178   : > { %1518 = vmatpush.bf16.msra.mxu3 %v4254_v8 }
 0x179   : > { %1333 = vmatpush.bf16.msra.mxu0 %v4229_v4 }
 0x17a   : > { %1395 = vmatpush.bf16.msra.mxu1 %v4237_v6 }
 0x17b   : > { %1457 = vmatpush.bf16.msra.mxu2 %v4245_v7 }
 0x17c   : > { %1519 = vmatpush.bf16.msra.mxu3 %v4253_v14 }
 0x17d   : > { %1334 = vmatpush.bf16.msra.mxu0 %v4228_v10 }
 0x17e   : > { %1396 = vmatpush.bf16.msra.mxu1 %v4236_v13 }
 0x17f   : > { %1458 = vmatpush.bf16.msra.mxu2 %v4244_v9 }
 0x180   : > { %1520 = vmatpush.bf16.msra.mxu3 %v4252_v18 }
 0x181   : > { %1335 = vmatpush.bf16.msra.mxu0 %v4227_v15 }
 0x182   : > { %1397 = vmatpush.bf16.msra.mxu1 %v4235_v16 }
 0x183   : > { %1459 = vmatpush.bf16.msra.mxu2 %v4243_v17 }
 0x184   : > { %1521 = vmatpush.bf16.msra.mxu3 %v4251_v22 }
 0x185   : > { %1336 = vmatpush.bf16.msra.mxu0 %v4226_v20 }
 0x186   : > { %1398 = vmatpush.bf16.msra.mxu1 %v4234_v21 }
 0x187   : > { %1460 = vmatpush.bf16.msra.mxu2 %v4242_v19 }
 0x188   : > { %1522 = vmatpush.bf16.msra.mxu3 %v4250_v26 }
 0x189   : > { %1337 = vmatpush.bf16.msra.mxu0 %v4225_v24 }
 0x18a   : > { %1399 = vmatpush.bf16.msra.mxu1 %v4233_v25 }
 0x18b   : > { %1461 = vmatpush.bf16.msra.mxu2 %v4241_v23 }
 0x18c   : > { %1338 = vmatmul.bf16.vlgmr.msra.gmra.mxu0 %v4928_v29  ;;  %1523 = vmatpush.bf16.msra.mxu3 %v4249_v27 }
 0x18d   : > { %1400 = vmatmul.bf16.vlgmr.msra.gmra.mxu1 %v4928_v29 }
 0x18e   : > { %1462 = vmatmul.bf16.vlgmr.msra.gmra.mxu2 %v4928_v29 }
 0x18f   : > { %1524 = vmatmul.bf16.vlgmr.msra.gmra.mxu3 %v4928_v29 }
 0x1c9   : > { %v843_v28 = vpop.f32.mrf.mxu0 }
 0x1ca   : > { %v905_v30 = vpop.f32.mrf.mxu1  ;;  %v1530_v50 = vpack.c.bf16 %v843_v28, %v843_v28 }
 0x1cb   : > { %v1532_v52 = vpack.c.bf16 %v905_v30, %v905_v30 }
 0x1cc   : > { %v1556_v1 = vunpack.c.l.b16 %v1530_v50 }
 0x1cd   : > { %v1587_v2 = vunpack.c.l.b16 %v1532_v52 }
 0x1d1   : > { %v967_v32 = vpop.f32.mrf.mxu2  ;;  %v845_v33 = vpop.f32.mrf.mxu0 }
 0x1d2   : > { %v1029_v31 = vpop.f32.mrf.mxu3  ;;  %v907_v34 = vpop.f32.mrf.mxu1  ;;  %v1531_v53 = vpack.c.bf16 %v845_v33, %v845_v33  ;;  %v1534_v8 = vpack.c.bf16 %v967_v32, %v967_v32 }
 0x1d3   : > { %v1533_v56 = vpack.c.bf16 %v907_v34, %v907_v34  ;;  %v1536_v9 = vpack.c.bf16 %v1029_v31, %v1029_v31 }
 0x1d4   : > { %v1557_v3 = vunpack.c.l.b16 %v1531_v53  ;;  %v1617_v20 = vunpack.c.l.b16 %v1534_v8 }
 0x1d5   : > { %v1588_v4 = vunpack.c.l.b16 %v1533_v56  ;;  %v1647_v22 = vunpack.c.l.b16 %v1536_v9 }
 0x1d6   : > { %v1558_v16 = vpack.c.b16 %v1557_v3, %v1556_v1 }
 0x1d7   : > { %v1589_v17 = vpack.c.b16 %v1588_v4, %v1587_v2 }
 0x1d9   : > { %v969_v36 = vpop.f32.mrf.mxu2 }
 0x1da   : > { %v1031_v35 = vpop.f32.mrf.mxu3  ;;  %v1535_v10 = vpack.c.bf16 %v969_v36, %v969_v36 }
 0x1db   : > { %v1537_v13 = vpack.c.bf16 %v1031_v35, %v1031_v35 }
 0x1dc   : > { %v1618_v21 = vunpack.c.l.b16 %v1535_v10 }
 0x1dd   : > { %v1648_v23 = vunpack.c.l.b16 %v1537_v13 }
 0x1de   : > { %v1619_v24 = vpack.c.b16 %v1618_v21, %v1617_v20 }
 0x1df   : > { %v1649_v25 = vpack.c.b16 %v1648_v23, %v1647_v22 }
 0x1e9   : > { %v1091_v37 = vpop.f32.mrf.mxu0 }
 0x1ea   : > { %v1153_v38 = vpop.f32.mrf.mxu1  ;;  %v1538_v39 = vpack.c.bf16 %v1091_v37, %v1091_v37 }
 0x1eb   : > { %v1540_v40 = vpack.c.bf16 %v1153_v38, %v1153_v38 }
 0x1ec   : > { %v1561_v45 = vunpack.c.l.b16 %v1538_v39 }
 0x1ed   : > { %v1592_v46 = vunpack.c.l.b16 %v1540_v40 }
 0x1f1   : > { %v1215_v41 = vpop.f32.mrf.mxu2  ;;  %v1093_v43 = vpop.f32.mrf.mxu0 }
 0x1f2   : > { %v1277_v42 = vpop.f32.mrf.mxu3  ;;  %v1155_v44 = vpop.f32.mrf.mxu1  ;;  %v1539_v47 = vpack.c.bf16 %v1093_v43, %v1093_v43  ;;  %v1542_v57 = vpack.c.bf16 %v1215_v41, %v1215_v41 }
 0x1f3   : > { %v1541_v48 = vpack.c.bf16 %v1155_v44, %v1155_v44  ;;  %v1544_v51 = vpack.c.bf16 %v1277_v42, %v1277_v42 }
 0x1f4   : > { %v1562_v49 = vunpack.c.l.b16 %v1539_v47  ;;  %v1622_v5 = vunpack.c.l.b16 %v1542_v57 }
 0x1f5   : > { %v1593_v29 = vunpack.c.l.b16 %v1541_v48  ;;  %v1652_v62 = vunpack.c.l.b16 %v1544_v51 }
 0x1f6   : > { %v1563_v54 = vpack.c.b16 %v1562_v49, %v1561_v45 }
 0x1f7   : > { %v1594_v55 = vpack.c.b16 %v1593_v29, %v1592_v46 }
 0x1f8   : > { %v1569_v60 = vsel %vm1564_vm4, %v1563_v54, 0 }
 0x1f9   : > { %v1217_v58 = vpop.f32.mrf.mxu2  ;;  %v1599_v61 = vsel %vm1564_vm4, %v1594_v55, 0  ;;  %1578 = vmatpush.bf16.xpose.msrb.mxu0 %v1569_v60 }
 0x1fa   : > { %v1279_v59 = vpop.f32.mrf.mxu3  ;;  %v1543_v63 = vpack.c.bf16 %v1217_v58, %v1217_v58  ;;  %1608 = vmatpush.bf16.xpose.msrb.mxu1 %v1599_v61 }
 0x1fb   : > { %v1545_v0 = vpack.c.bf16 %v1279_v59, %v1279_v59 }
 0x1fc   : > { %v1623_v6 = vunpack.c.l.b16 %v1543_v63 }
 0x1fd   : > { %v1653_v7 = vunpack.c.l.b16 %v1545_v0 }
 0x1fe   : > { %v1624_v14 = vpack.c.b16 %v1623_v6, %v1622_v5 }
 0x1ff   : > { %v1654_v15 = vpack.c.b16 %v1653_v7, %v1652_v62 }
 0x200   : > { %v1629_v18 = vsel %vm1564_vm4, %v1624_v14, 0  ;;  %3778 = vmatmul.msk.bf16.vlgmr.msrb.gmra.mxu0 %vm1564_vm4, %v1558_v16 }
 0x201   : > { %v1659_v19 = vsel %vm1564_vm4, %v1654_v15, 0  ;;  %1638 = vmatpush.bf16.xpose.msrb.mxu2 %v1629_v18  ;;  %3779 = vmatmul.msk.bf16.vlgmr.msrb.gmra.mxu1 %vm1564_vm4, %v1589_v17 }
 0x202   : > { %1668 = vmatpush.bf16.xpose.msrb.mxu3 %v1659_v19 }
 0x208   : > { %3780 = vmatmul.msk.bf16.vlgmr.msrb.gmra.mxu2 %vm1564_vm4, %v1619_v24 }
 0x209   : > { %3781 = vmatmul.msk.bf16.vlgmr.msrb.gmra.mxu3 %vm1564_vm4, %v1649_v25  ;;  %v1339_v26 = vpop.f32.mrf.mxu0 }
 0x20a   : > { %v1401_v27 = vpop.f32.mrf.mxu1  ;;  %v1546_v28 = vpack.c.bf16 %v1339_v26, %v1339_v26 }
 0x20b   : > { %v1548_v30 = vpack.c.bf16 %v1401_v27, %v1401_v27 }
 0x20c   : > { %v1779_v34 = vunpack.c.l.b16 %v1546_v28 }
 0x20d   : > { %v1807_v35 = vunpack.c.l.b16 %v1548_v30 }
 0x211   : > { %v1463_v31 = vpop.f32.mrf.mxu2  ;;  %v1341_v32 = vpop.f32.mrf.mxu0 }
 0x212   : > { %v1403_v33 = vpop.f32.mrf.mxu1  ;;  %v1547_v36 = vpack.c.bf16 %v1341_v32, %v1341_v32  ;;  %v1550_v40 = vpack.c.bf16 %v1463_v31, %v1463_v31  ;;  %v1525_v41 = vpop.f32.mrf.mxu3 }
 0x213   : > { %v1549_v37 = vpack.c.bf16 %v1403_v33, %v1403_v33  ;;  %v1552_v47 = vpack.c.bf16 %v1525_v41, %v1525_v41 }
 0x214   : > { %v1780_v38 = vunpack.c.l.b16 %v1547_v36  ;;  %v1835_v45 = vunpack.c.l.b16 %v1550_v40 }
 0x215   : > { %v1808_v39 = vunpack.c.l.b16 %v1549_v37  ;;  %v1863_v50 = vunpack.c.l.b16 %v1552_v47 }
 0x216   : > { %v1781_v42 = vpack.c.b16 %v1780_v38, %v1779_v34 }
 0x217   : > { %v1809_v43 = vpack.c.b16 %v1808_v39, %v1807_v35 }
 0x218   : > { %1793 = vmatpush.bf16.msra.mxu0 %v1781_v42 }
 0x219   : > { %v1465_v44 = vpop.f32.mrf.mxu2  ;;  %1821 = vmatpush.bf16.msra.mxu1 %v1809_v43 }
 0x21a   : > { %v1551_v46 = vpack.c.bf16 %v1465_v44, %v1465_v44  ;;  %v1527_v29 = vpop.f32.mrf.mxu3 }
 0x21b   : > { %v1553_v51 = vpack.c.bf16 %v1527_v29, %v1527_v29 }
 0x21c   : > { %v1836_v48 = vunpack.c.l.b16 %v1551_v46 }
 0x21d   : > { %v1864_v52 = vunpack.c.l.b16 %v1553_v51 }
 0x21e   : > { %v1837_v49 = vpack.c.b16 %v1836_v48, %v1835_v45 }
 0x21f   : > { %v1865_v53 = vpack.c.b16 %v1864_v52, %v1863_v50 }
 0x220   : > { %1849 = vmatpush.bf16.msra.mxu2 %v1837_v49 }
 0x221   : > { %1877 = vmatpush.bf16.msra.mxu3 %v1865_v53 }
 0x27d   : > { %v1580_v54 = vpop.f32.mrf.mxu0 }
 0x27e   : > { %v1676_v55 = vsel %vm1675_vm5, %v1580_v54, -inf  ;;  %v1610_v62 = vpop.f32.mrf.mxu1 }
 0x27f   : > { %1677 = vmax.xlane.f32.xlu2 %v1676_v55  ;;  %v1682_v4 = vsel %vm1675_vm5, %v1610_v62, -inf }
 0x285   : > { %v1582_v56 = vpop.f32.mrf.mxu0 }
 0x286   : > { %v1679_v57 = vsel %vm1675_vm5, %v1582_v56, -inf  ;;  %v1612_v3 = vpop.f32.mrf.mxu1 }
 0x287   : > { %1680 = vmax.xlane.f32.xlu2 %v1679_v57  ;;  %v1685_v5 = vsel %vm1675_vm5, %v1612_v3, -inf }
 0x28b   : > { %v1640_v58 = vpop.f32.mrf.mxu2 }
 0x28c   : > { %v1670_v59 = vpop.f32.mrf.mxu3  ;;  %v1688_v61 = vsel %vm1675_vm5, %v1640_v58, -inf }
 0x28d   : > { %v1694_v60 = vsel %vm1675_vm5, %v1670_v59, -inf  ;;  %1689 = vmax.xlane.f32.xlu0 %v1688_v61 }
 0x28e   : > { %1695 = vmax.xlane.f32.xlu1 %v1694_v60 }
 0x293   : > { %v1642_v63 = vpop.f32.mrf.mxu2 }
 0x294   : > { %v1672_v0 = vpop.f32.mrf.mxu3  ;;  %v1691_v2 = vsel %vm1675_vm5, %v1642_v63, -inf }
 0x295   : > { %v1697_v1 = vsel %vm1675_vm5, %v1672_v0, -inf  ;;  %1692 = vmax.xlane.f32.xlu0 %v1691_v2 }
 0x296   : > { %1698 = vmax.xlane.f32.xlu1 %v1697_v1 }
 0x29d   : > { %1683 = vmax.xlane.f32.xlu0 %v1682_v4 }
 0x29e   : > { %1686 = vmax.xlane.f32.xlu1 %v1685_v5 }
 0x2f2   : > { %v1678_v6 = vpop.xlane.xlu2 %1677 }
 0x2f3   : > { %v1700_v26 = vsub.f32 %v1580_v54, %v1678_v6 }
 0x2f5   : > { %v1708_v30 = vmul.f32 1.442695, %v1700_v26 }
 0x2fa   : > { %v1681_v7 = vpop.xlane.xlu2 %1680 }
 0x2fb   : > { %v1701_v14 = vsub.f32 %v1582_v56, %v1681_v7 }
 0x2fd   : > { %v1710_v17 = vmul.f32 1.442695, %v1701_v14 }
 0x300   : > { %v1690_v9 = vpop.xlane.xlu0 %1689 }
 0x301   : > { %v1696_v8 = vpop.xlane.xlu1 %1695  ;;  %v1704_v13 = vsub.f32 %v1640_v58, %v1690_v9 }
 0x302   : > { %v1706_v10 = vsub.f32 %v1670_v59, %v1696_v8 }
 0x303   : > { %v1716_v16 = vmul.f32 1.442695, %v1704_v13 }
 0x304   : > { %v1720_v15 = vmul.f32 1.442695, %v1706_v10 }
 0x306   : > { %4456 = vpow2.f32 %v1720_v15 }
 0x307   : > { %4458 = vpow2.f32 %v1716_v16 }
 0x308   : > { %v1693_v19 = vpop.xlane.xlu0 %1692  ;;  %4460 = vpow2.f32 %v1710_v17 }
 0x309   : > { %v1699_v18 = vpop.xlane.xlu1 %1698  ;;  %v1705_v21 = vsub.f32 %v1642_v63, %v1693_v19 }
 0x30a   : > { %v1707_v20 = vsub.f32 %v1672_v0, %v1699_v18 }
 0x30b   : > { %v1718_v24 = vmul.f32 1.442695, %v1705_v21 }
 0x30c   : > { %v4457_v22 = vpop.eup %4456  ;;  %v1722_v23 = vmul.f32 1.442695, %v1707_v20 }
 0x30d   : > { %v4459_v25 = vpop.eup %4458  ;;  %v1742_v27 = vsel %vm1675_vm5, %v4457_v22, 0.0 }
 0x30e   : > { %4462 = vpow2.f32 %v1722_v23  ;;  %1743 = vadd.xlane.f32.xlu1 %v1742_v27  ;;  %v1736_v28 = vsel %vm1675_vm5, %v4459_v25, 0.0  ;;  %v4461_v32 = vpop.eup %4460 }
 0x30f   : > { %4464 = vpow2.f32 %v1718_v24  ;;  %1737 = vadd.xlane.f32.xlu2 %v1736_v28  ;;  %v1727_v40 = vsel %vm1675_vm5, %v4461_v32, 0.0 }
 0x310   : > { %v1684_v31 = vpop.xlane.xlu0 %1683  ;;  %4466 = vpow2.f32 %v1708_v30 }
 0x311   : > { %v1702_v33 = vsub.f32 %v1610_v62, %v1684_v31  ;;  %v1687_v34 = vpop.xlane.xlu1 %1686  ;;  %v4262_v31 = vld [vmem:[%s4760_s30 + $0x28] sm:$0xff] }
 0x312   : > { %v1703_v38 = vsub.f32 %v1612_v3, %v1687_v34  ;;  %2002 = vmatpush.bf16.msrb.mxu2 %v4262_v31  ;;  %v4261_v34 = vld [vmem:[%s4760_s30 + $0x20] sm:$0xff] }
 0x313   : > { %v1712_v36 = vmul.f32 1.442695, %v1702_v33  ;;  %v4258_v33 = vld [vmem:[%s4760_s30 + $0x8] sm:$0xff] }
 0x314   : > { %v4463_v35 = vpop.eup %4462  ;;  %v1714_v42 = vmul.f32 1.442695, %v1703_v38  ;;  %1934 = vmatpush.bf16.msrb.mxu0 %v4258_v33  ;;  %v4259_v38 = vld [vmem:[%s4760_s30 + $0x10] sm:$0xff] }
 0x315   : > { %v4465_v37 = vpop.eup %4464  ;;  %v1745_v39 = vsel %vm1675_vm5, %v4463_v35, 0.0  ;;  %4468 = vpow2.f32 %v1712_v36  ;;  %v4257_v36 = vld [vmem:[%s4760_s30] sm:$0xff] }
 0x316   : > { %v1739_v41 = vsel %vm1675_vm5, %v4465_v37, 0.0  ;;  %1728 = vadd.xlane.f32.xlu1 %v1727_v40  ;;  %v4467_v43 = vpop.eup %4466  ;;  %4470 = vpow2.f32 %v1714_v42  ;;  %2003 = vmatpush.bf16.msrb.mxu2 %v4261_v34 }
 0x317   : > { %1740 = vadd.xlane.f32.xlu0 %v1739_v41  ;;  %1746 = vadd.xlane.f32.xlu2 %v1745_v39  ;;  %v1724_v46 = vsel %vm1675_vm5, %v4467_v43, 0.0 }
 0x318   : > { %1935 = vmatpush.bf16.msrb.mxu0 %v4257_v36 }
 0x31b   : > { %v4469_v44 = vpop.eup %4468 }
 0x31c   : > { %v1730_v45 = vsel %vm1675_vm5, %v4469_v44, 0.0  ;;  %v4471_v47 = vpop.eup %4470 }
 0x31d   : > { %v1733_v48 = vsel %vm1675_vm5, %v4471_v47, 0.0 }
 0x31f   : > { %1725 = vadd.xlane.f32.xlu0 %v1724_v46  ;;  %1731 = vadd.xlane.f32.xlu2 %v1730_v45 }
 0x327   : > { %1734 = vadd.xlane.f32.xlu0 %v1733_v48 }
 0x381   : > { %v1744_v49 = vpop.xlane.xlu1 %1743 }
 0x382   : > { %v1738_v29 = vpop.xlane.xlu2 %1737 }
 0x383   : > { %4472 = vrcp.f32 %v1738_v29 }
 0x384   : > { %4474 = vrcp.f32 %v1744_v49 }
 0x389   : > { %v1729_v50 = vpop.xlane.xlu1 %1728  ;;  %v4473_v53 = vpop.eup %4472 }
 0x38a   : > { %v1741_v51 = vpop.xlane.xlu0 %1740  ;;  %v1747_v52 = vpop.xlane.xlu2 %1746  ;;  %v1760_v55 = vmul.f32 %v4473_v53, %v4459_v25 }
 0x38b   : > { %4476 = vrcp.f32 %v1741_v51  ;;  %v4475_v54 = vpop.eup %4474 }
 0x38c   : > { %4478 = vrcp.f32 %v1747_v52  ;;  %v1762_v56 = vmul.f32 %v4475_v54, %v4457_v22  ;;  %v1768_v59 = vpack.c.bf16 %v1760_v55, %v1760_v55 }
 0x38d   : > { %4480 = vrcp.f32 %v1729_v50 }
 0x38e   : > { %v1770_v0 = vpack.c.bf16 %v1762_v56, %v1762_v56  ;;  %v1830_v4 = vunpack.c.l.b16 %v1768_v59 }
 0x390   : > { %v1858_v7 = vunpack.c.l.b16 %v1770_v0 }
 0x391   : > { %v4477_v57 = vpop.eup %4476 }
 0x392   : > { %v4479_v58 = vpop.eup %4478  ;;  %v1761_v60 = vmul.f32 %v4477_v57, %v4465_v37  ;;  %v1726_v61 = vpop.xlane.xlu0 %1725  ;;  %v4260_v37 = vld [vmem:[%s4760_s30 + $0x18] sm:$0xff] }
 0x393   : > { %v1732_v62 = vpop.xlane.xlu2 %1731  ;;  %v4481_v63 = vpop.eup %4480  ;;  %v1763_v1 = vmul.f32 %v4479_v58, %v4463_v35  ;;  %4482 = vrcp.f32 %v1726_v61  ;;  %v4263_v35 = vld [vmem:[%s4760_s30 + $0x30] sm:$0xff]  ;;  %1968 = vmatpush.bf16.msrb.mxu1 %v4260_v37 }
 0x394   : > { %v1769_v2 = vpack.c.bf16 %v1761_v60, %v1761_v60  ;;  %4484 = vrcp.f32 %v1732_v62  ;;  %v1757_v6 = vmul.f32 %v4481_v63, %v4461_v32  ;;  %v4264_v32 = vld [vmem:[%s4760_s30 + $0x38] sm:$0xff] }
 0x395   : > { %v1771_v3 = vpack.c.bf16 %v1763_v1, %v1763_v1  ;;  %2036 = vmatpush.bf16.msrb.mxu3 %v4264_v32 }
 0x396   : > { %v1831_v5 = vunpack.c.l.b16 %v1769_v2  ;;  %v1765_v14 = vpack.c.bf16 %v1757_v6, %v1757_v6 }
 0x397   : > { %v1859_v8 = vunpack.c.l.b16 %v1771_v3  ;;  %1969 = vmatpush.bf16.msrb.mxu1 %v4259_v38  ;;  %v3936_v38 = vld [vmem:[%s4765_s25 + $0xe0] sm:$0xf] }
 0x398   : > { %v1832_v9 = vpack.c.b16 %v1831_v5, %v1830_v4  ;;  %v1775_v19 = vunpack.c.l.b16 %v1765_v14  ;;  %v5043_v5 = vld [vmem:[%s4775_s29] sm:$0xff] }
 0x399   : > { %v4483_v10 = vpop.eup %4482  ;;  %v1860_v13 = vpack.c.b16 %v1859_v8, %v1858_v7  ;;  %2037 = vmatpush.bf16.msrb.mxu3 %v4263_v35 }
 0x39a   : > { %v1756_v15 = vmul.f32 %v4483_v10, %v4467_v43  ;;  %v1735_v16 = vpop.xlane.xlu0 %1734  ;;  %3784 = vmatmul.msk.bf16.vlgmr.msra.gmra.mxu2 %vm1675_vm5, %v1832_v9  ;;  %v4485_v17 = vpop.eup %4484  ;;  %v2050_v9 = vperm.slane %v5043_v5, 1 }
 0x39b   : > { %4486 = vrcp.f32 %v1735_v16  ;;  %3785 = vmatmul.msk.bf16.vlgmr.msra.gmra.mxu3 %vm1675_vm5, %v1860_v13  ;;  %v1758_v21 = vmul.f32 %v4485_v17, %v4469_v44 }
 0x39c   : > { %v1764_v18 = vpack.c.bf16 %v1756_v15, %v1756_v15 }
 0x39d   : > { %v1766_v24 = vpack.c.bf16 %v1758_v21, %v1758_v21 }
 0x39e   : > { %v1774_v20 = vunpack.c.l.b16 %v1764_v18 }
 0x39f   : > { %v1802_v27 = vunpack.c.l.b16 %v1766_v24  ;;  %v4613_v24 = vmov 128.0  }
 0x3a0   : > { %v1776_v22 = vpack.c.b16 %v1775_v19, %v1774_v20  ;;  %4488 = vrcp.f32 %v4613_v24  ;;  %v3872_v24 = vld [vmem:[%s4765_s25 + $0x60] sm:$0xf] }
 0x3a1   : > { %v4487_v23 = vpop.eup %4486 }
 0x3a2   : > { %v1759_v25 = vmul.f32 %v4487_v23, %v4471_v47  ;;  %3782 = vmatmul.msk.bf16.vlgmr.msra.gmra.mxu0 %vm1675_vm5, %v1776_v22 }
 0x3a4   : > { %v1767_v26 = vpack.c.bf16 %v1759_v25, %v1759_v25 }
 0x3a6   : > { %v1803_v28 = vunpack.c.l.b16 %v1767_v26  ;;  %v4489_v25 = vpop.eup %4488 }
 0x3a7   : > { %v2060_v26 = vmul.f32 128.0, %v4489_v25  ;;  %vm2064_vm6 = vweird.f32 %v4489_v25 }
 0x3a8   : > { %v1804_v30 = vpack.c.b16 %v1803_v28, %v1802_v27 }
 0x3a9   : > { %v2061_v27 = vsub.f32 1.0, %v2060_v26  ;;  %v4277_v26 = vld [vmem:[%s4765_s25 + $0x64] sm:$0xf] }
 0x3aa   : > { %3783 = vmatmul.msk.bf16.vlgmr.msra.gmra.mxu1 %vm1675_vm5, %v1804_v30 }
 0x3ab   : > { %v2062_v28 = vmul.f32 %v4489_v25, %v2061_v27 }
 0x3ad   : > { %v2063_v30 = vadd.f32 %v4489_v25, %v2062_v28  ;;  %v3874_v28 = vld [vmem:[%s4765_s25 + $0x70] sm:$0xf0] }
 0x41d   : > { %v1851_v39 = vpop.f32.mrf.mxu2 }
 0x41e   : > { %v1879_v40 = vpop.f32.mrf.mxu3  ;;  %v1888_v42 = vpack.c.bf16 %v1851_v39, %v1851_v39  ;;  %v4295_v39 = vld [vmem:[%s4765_s25 + $0xec] sm:$0xf0] }
 0x41f   : > { %v1795_v41 = vpop.f32.mrf.mxu0  ;;  %v1890_v43 = vpack.c.bf16 %v1879_v40, %v1879_v40  ;;  %v4293_v40 = vld [vmem:[%s4765_s25 + $0xe4] sm:$0xf] }
 0x420   : > { %v1884_v45 = vpack.c.bf16 %v1795_v41, %v1795_v41  ;;  %v1978_v50 = vunpack.c.l.b16 %v1888_v42  ;;  %v3937_v41 = vor.u32 %v4295_v39, %v3936_v38  ;;  %v3938_v42 = vld [vmem:[%s4765_s25 + $0xf0] sm:$0xf0]  ;;  %v3856_v38 = vld [vmem:[%s4765_s25 + $0x40] sm:$0xf]  ;;  %v4275_v39 = vld [vmem:[%s4765_s25 + $0x4c] sm:$0xf0] }
 0x421   : > { %v2012_v53 = vunpack.c.l.b16 %v1890_v43  ;;  %v3944_v43 = vld [vmem:[%s4765_s25 + $0xe8] sm:$0xf] }
 0x422   : > { %v1910_v55 = vunpack.c.l.b16 %v1884_v45  ;;  %v3941_v45 = vor.u32 %v4293_v40, %v3938_v42  ;;  %2305 = vmatpush.bf16.msra.mxu0 %v3937_v41  ;;  %v4273_v40 = vld [vmem:[%s4765_s25 + $0x44] sm:$0xf]  ;;  %v3857_v41 = vor.u32 %v4275_v39, %v3856_v38  ;;  %v3858_v42 = vld [vmem:[%s4765_s25 + $0x50] sm:$0xf0]  ;;  %v2105_v38 = vperm.slane %v5043_v5, 4 }
 0x424   : > { %2319 = vmatpush.bf16.msra.mxu1 %v3941_v45  ;;  %v3861_v45 = vor.u32 %v4273_v40, %v3858_v42  ;;  %v5137_v42 = vld [vmem:[%s4775_s29 + $0x8] sm:$0xff] }
 0x425   : > { %v1853_v44 = vpop.f32.mrf.mxu2 }
 0x426   : > { %v1889_v46 = vpack.c.bf16 %v1853_v44, %v1853_v44  ;;  %v1881_v47 = vpop.f32.mrf.mxu3  ;;  %v4296_v44 = vld [vmem:[%s4765_s25 + $0xf4] sm:$0xf0] }
 0x427   : > { %v1891_v48 = vpack.c.bf16 %v1881_v47, %v1881_v47  ;;  %v1797_v49 = vpop.f32.mrf.mxu0  ;;  %v1823_v29 = vpop.f32.mrf.mxu1  ;;  %v4294_v47 = vld [vmem:[%s4765_s25 + $0xec] sm:$0xf] }
 0x428   : > { %v1979_v51 = vunpack.c.l.b16 %v1889_v46  ;;  %v1885_v52 = vpack.c.bf16 %v1797_v49, %v1797_v49  ;;  %v1886_v60 = vpack.c.bf16 %v1823_v29, %v1823_v29  ;;  %v3945_v46 = vor.u32 %v4296_v44, %v3944_v43  ;;  %v3920_v29 = vld [vmem:[%s4765_s25 + $0xc0] sm:$0xf]  ;;  %v3864_v43 = vld [vmem:[%s4765_s25 + $0x48] sm:$0xf]  ;;  %v4276_v44 = vld [vmem:[%s4765_s25 + $0x54] sm:$0xf0] }
 0x429   : > { %v2013_v54 = vunpack.c.l.b16 %v1891_v48  ;;  %v3946_v48 = vld [vmem:[%s4765_s25 + $0xf8] sm:$0xf0] }
 0x42a   : > { %v1980_v56 = vpack.c.b16 %v1979_v51, %v1978_v50  ;;  %v1911_v57 = vunpack.c.l.b16 %v1885_v52  ;;  %v1944_v63 = vunpack.c.l.b16 %v1886_v60  ;;  %v3949_v49 = vor.u32 %v4294_v47, %v3946_v48  ;;  %2333 = vmatpush.bf16.msra.mxu2 %v3945_v46  ;;  %v4291_v50 = vld [vmem:[%s4765_s25 + $0xcc] sm:$0xf0]  ;;  %v4289_v51 = vld [vmem:[%s4765_s25 + $0xc4] sm:$0xf]  ;;  %v4274_v47 = vld [vmem:[%s4765_s25 + $0x4c] sm:$0xf] }
 0x42b   : > { %v2014_v58 = vpack.c.b16 %v2013_v54, %v2012_v53  ;;  %v3921_v52 = vor.u32 %v4291_v50, %v3920_v29  ;;  %v3922_v53 = vld [vmem:[%s4765_s25 + $0xd0] sm:$0xf0]  ;;  %v3928_v54 = vld [vmem:[%s4765_s25 + $0xc8] sm:$0xf]  ;;  %v3865_v46 = vor.u32 %v4276_v44, %v3864_v43  ;;  %v3866_v48 = vld [vmem:[%s4765_s25 + $0x58] sm:$0xf0] }
 0x42c   : > { %v1912_v59 = vpack.c.b16 %v1911_v57, %v1910_v55  ;;  %3812 = vmatmul.msk.bf16.vlgmr.msrb.gmra.mxu2 %vm1564_vm4, %v1980_v56  ;;  %2347 = vmatpush.bf16.msra.mxu3 %v3949_v49  ;;  %v4292_v55 = vld [vmem:[%s4765_s25 + $0xd4] sm:$0xf0]  ;;  %v3925_v56 = vor.u32 %v4289_v51, %v3922_v53  ;;  %v3869_v49 = vor.u32 %v4274_v47, %v3866_v48  ;;  %v3840_v29 = vld [vmem:[%s4765_s25 + $0x20] sm:$0xf]  ;;  %v4271_v50 = vld [vmem:[%s4765_s25 + $0x2c] sm:$0xf0] }
 0x42d   : > { %3821 = vmatmul.msk.bf16.vlgmr.msrb.gmra.mxu3 %vm1564_vm4, %v2014_v58  ;;  %v3929_v57 = vor.u32 %v4292_v55, %v3928_v54  ;;  %v4290_v58 = vld [vmem:[%s4765_s25 + $0xcc] sm:$0xf]  ;;  %2306 = vmatpush.bf16.msra.mxu0 %v3921_v52  ;;  %v4269_v51 = vld [vmem:[%s4765_s25 + $0x24] sm:$0xf]  ;;  %v3841_v52 = vor.u32 %v4271_v50, %v3840_v29  ;;  %v3842_v53 = vld [vmem:[%s4765_s25 + $0x30] sm:$0xf0] }
 0x42e   : > { %3794 = vmatmul.msk.bf16.vlgmr.msrb.gmra.mxu0 %vm1564_vm4, %v1912_v59  ;;  %v3930_v59 = vld [vmem:[%s4765_s25 + $0xd8] sm:$0xf0]  ;;  %2320 = vmatpush.bf16.msra.mxu1 %v3925_v56  ;;  %v3848_v54 = vld [vmem:[%s4765_s25 + $0x28] sm:$0xf]  ;;  %v4272_v55 = vld [vmem:[%s4765_s25 + $0x34] sm:$0xf0] }
 0x42f   : > { %v1825_v61 = vpop.f32.mrf.mxu1  ;;  %v3933_v60 = vor.u32 %v4290_v58, %v3930_v59  ;;  %2334 = vmatpush.bf16.msra.mxu2 %v3929_v57  ;;  %v3845_v57 = vor.u32 %v4269_v51, %v3842_v53  ;;  %v3849_v58 = vor.u32 %v4272_v55, %v3848_v54  ;;  %v4270_v59 = vld [vmem:[%s4765_s25 + $0x2c] sm:$0xf]  ;;  %v2142_v43 = vperm.slane %v5137_v42, 0  ;;  %v5148_v48 = vld [vmem:[%s4775_s29 + $0x10] sm:$0xff] }
 0x430   : > { %v1887_v62 = vpack.c.bf16 %v1825_v61, %v1825_v61  ;;  %v3904_v61 = vld [vmem:[%s4765_s25 + $0xa0] sm:$0xf] }
 0x431   : > { %2348 = vmatpush.bf16.msra.mxu3 %v3933_v60  ;;  %v3850_v60 = vld [vmem:[%s4765_s25 + $0x38] sm:$0xf0] }
 0x432   : > { %v1945_v0 = vunpack.c.l.b16 %v1887_v62  ;;  %v4287_v62 = vld [vmem:[%s4765_s25 + $0xac] sm:$0xf0] }
 0x434   : > { %v1946_v1 = vpack.c.b16 %v1945_v0, %v1944_v63  ;;  %v4285_v63 = vld [vmem:[%s4765_s25 + $0xa4] sm:$0xf]  ;;  %v3905_v0 = vor.u32 %v4287_v62, %v3904_v61  ;;  %v3824_v61 = vld [vmem:[%s4765_s25] sm:$0xf] }
 0x436   : > { %3803 = vmatmul.msk.bf16.vlgmr.msrb.gmra.mxu1 %vm1564_vm4, %v1946_v1  ;;  %v3906_v1 = vld [vmem:[%s4765_s25 + $0xb0] sm:$0xf0]  ;;  %2307 = vmatpush.bf16.msra.mxu0 %v3905_v0  ;;  %v4267_v0 = vld [vmem:[%s4765_s25 + $0xc] sm:$0xf0] }
 0x4ab   : > { %v1937_v2 = vpop.f32.mrf.mxu0 }
 0x4af   : > { %v2005_v3 = vpop.f32.mrf.mxu2 }
 0x4b0   : > { %v2039_v7 = vpop.f32.mrf.mxu3 }
 0x4b3   : > { %v1971_v4 = vpop.f32.mrf.mxu1  ;;  %v1939_v14 = vpop.f32.mrf.mxu0 }
 0x4b4   : > { %v2044_v6 = vadd.f32 %v1971_v4, %v1937_v2  ;;  %v3912_v2 = vld [vmem:[%s4765_s25 + $0xa8] sm:$0xf]  ;;  %v3909_v4 = vor.u32 %v4285_v63, %v3906_v1  ;;  %v3853_v63 = vor.u32 %v4270_v59, %v3850_v60  ;;  %v4265_v1 = vld [vmem:[%s4765_s25 + $0x4] sm:$0xf] }
 0x4b6   : > { %v2045_v8 = vadd.f32 %v2044_v6, %v2005_v3  ;;  %v4288_v3 = vld [vmem:[%s4765_s25 + $0xb4] sm:$0xf0]  ;;  %2321 = vmatpush.bf16.msra.mxu1 %v3909_v4 }
 0x4b7   : > { %v2007_v18 = vpop.f32.mrf.mxu2  ;;  %v3913_v6 = vor.u32 %v4288_v3, %v3912_v2  ;;  %v3826_v2 = vld [vmem:[%s4765_s25 + $0x10] sm:$0xf0]  ;;  %v3825_v3 = vor.u32 %v4267_v0, %v3824_v61 }
 0x4b8   : > { %v2046_v10 = vadd.f32 %v2045_v8, %v2039_v7  ;;  %v2041_v20 = vpop.f32.mrf.mxu3  ;;  %v4286_v7 = vld [vmem:[%s4765_s25 + $0xac] sm:$0xf]  ;;  %v3914_v8 = vld [vmem:[%s4765_s25 + $0xb8] sm:$0xf0]  ;;  %v3829_v4 = vor.u32 %v4265_v1, %v3826_v2 }
 0x4b9   : > { %2335 = vmatpush.bf16.msra.mxu2 %v3913_v6  ;;  %v3832_v6 = vld [vmem:[%s4765_s25 + $0x8] sm:$0xf] }
 0x4ba   : > { %v2051_v13 = vadd.f32 %v2050_v9, %v2046_v10  ;;  %v3888_v10 = vld [vmem:[%s4765_s25 + $0x80] sm:$0xf] }
 0x4bb   : > { %v1973_v15 = vpop.f32.mrf.mxu1 }
 0x4bc   : > { %v2047_v16 = vadd.f32 %v1973_v15, %v1939_v14  ;;  %v2053_v17 = vadd.f32 %v2051_v13, %v4908_v11  ;;  %v5048_v11 = vsel %vm2064_vm6, %v4489_v25, %v2063_v30  ;;  %v4283_v13 = vld [vmem:[%s4765_s25 + $0x8c] sm:$0xf0]  ;;  %v4281_v14 = vld [vmem:[%s4765_s25 + $0x84] sm:$0xf]  ;;  %v3880_v30 = vld [vmem:[%s4765_s25 + $0x68] sm:$0xf] }
 0x4bd   : > { %v3889_v15 = vor.u32 %v4283_v13, %v3888_v10  ;;  %v4279_v25 = vld [vmem:[%s4765_s25 + $0x6c] sm:$0xf0]  ;;  %v3834_v13 = vld [vmem:[%s4765_s25 + $0x18] sm:$0xf0] }
 0x4be   : > { %v2048_v19 = vadd.f32 %v2047_v16, %v2007_v18  ;;  %2055 = vadd.xlane.f32.xlu1 %v2053_v17  ;;  %v3890_v16 = vld [vmem:[%s4765_s25 + $0x90] sm:$0xf0]  ;;  %v4284_v18 = vld [vmem:[%s4765_s25 + $0x94] sm:$0xf0]  ;;  %v3873_v27 = vor.u32 %v4279_v25, %v3872_v24 }
 0x4bf   : > { %2308 = vmatpush.bf16.msra.mxu0 %v3889_v15 }
 0x4c0   : > { %v2049_v21 = vadd.f32 %v2048_v19, %v2041_v20  ;;  %v3893_v19 = vor.u32 %v4281_v14, %v3890_v16 }
 0x4c2   : > { %v2052_v22 = vadd.f32 %v2050_v9, %v2049_v21  ;;  %v3917_v9 = vor.u32 %v4286_v7, %v3914_v8  ;;  %v4282_v21 = vld [vmem:[%s4765_s25 + $0x8c] sm:$0xf]  ;;  %2322 = vmatpush.bf16.msra.mxu1 %v3893_v19  ;;  %v4268_v7 = vld [vmem:[%s4765_s25 + $0x14] sm:$0xf0] }
 0x4c3   : > { %2309 = vmatpush.bf16.msra.mxu0 %v3873_v27  ;;  %v4266_v8 = vld [vmem:[%s4765_s25 + $0xc] sm:$0xf]  ;;  %v3833_v10 = vor.u32 %v4268_v7, %v3832_v6 }
 0x4c4   : > { %v2054_v23 = vadd.f32 %v2052_v22, %v4910_v12  ;;  %2349 = vmatpush.bf16.msra.mxu3 %v3917_v9  ;;  %v3898_v22 = vld [vmem:[%s4765_s25 + $0x98] sm:$0xf0]  ;;  %v3837_v14 = vor.u32 %v4266_v8, %v3834_v13 }
 0x4c6   : > { %2057 = vadd.xlane.f32.xlu2 %v2054_v23 }
 0x4c7   : > { %2310 = vmatpush.bf16.msra.mxu0 %v3857_v41 }
 0x4cb   : > { %2311 = vmatpush.bf16.msra.mxu0 %v3841_v52  ;;  %v5162_v52 = vld [vmem:[%s4775_s29 + $0x18] sm:$0xff] }
 0x4cf   : > { %2312 = vmatpush.bf16.msra.mxu0 %v3825_v3 }
 0x531   : > { %v2056_v31 = vpop.xlane.xlu1 %2055 }
 0x532   : > { %v2066_v12 = vmul.f32 %v5048_v11, %v2056_v31  ;;  %v4280_v31 = vld [vmem:[%s4765_s25 + $0x74] sm:$0xf0] }
 0x534   : > { %v5051_v32 = vsub.f32 %v2053_v17, %v2066_v12  ;;  %v3896_v17 = vld [vmem:[%s4765_s25 + $0x88] sm:$0xf]  ;;  %v3877_v12 = vor.u32 %v4277_v26, %v3874_v28 }
 0x535   : > { %v3897_v20 = vor.u32 %v4284_v18, %v3896_v17 }
 0x536   : > { %v2070_v33 = vmul.f32 %v5051_v32, %v5051_v32  ;;  %2323 = vmatpush.bf16.msra.mxu1 %v3877_v12  ;;  %v2102_v12 = vperm.slane %v5043_v5, 3 }
 0x537   : > { %2336 = vmatpush.bf16.msra.mxu2 %v3897_v20 }
 0x538   : > { %2072 = vadd.xlane.f32.xlu0 %v2070_v33  ;;  %v3881_v33 = vor.u32 %v4280_v31, %v3880_v30 }
 0x539   : > { %v2058_v34 = vpop.xlane.xlu2 %2057 }
 0x53a   : > { %v2067_v35 = vmul.f32 %v5048_v11, %v2058_v34  ;;  %v4278_v34 = vld [vmem:[%s4765_s25 + $0x6c] sm:$0xf]  ;;  %2324 = vmatpush.bf16.msra.mxu1 %v3861_v45 }
 0x53b   : > { %2337 = vmatpush.bf16.msra.mxu2 %v3881_v33 }
 0x53c   : > { %v5056_v36 = vsub.f32 %v2054_v23, %v2067_v35  ;;  %v3901_v23 = vor.u32 %v4282_v21, %v3898_v22  ;;  %v3882_v35 = vld [vmem:[%s4765_s25 + $0x78] sm:$0xf0] }
 0x53e   : > { %v2071_v37 = vmul.f32 %v5056_v36, %v5056_v36  ;;  %2350 = vmatpush.bf16.msra.mxu3 %v3901_v23  ;;  %2325 = vmatpush.bf16.msra.mxu1 %v3845_v57  ;;  %v2144_v57 = vperm.slane %v5162_v52, 0 }
 0x53f   : > { %2338 = vmatpush.bf16.msra.mxu2 %v3865_v46 }
 0x540   : > { %2074 = vadd.xlane.f32.xlu1 %v2071_v37  ;;  %v3885_v37 = vor.u32 %v4278_v34, %v3882_v35 }
 0x542   : > { %2351 = vmatpush.bf16.msra.mxu3 %v3885_v37  ;;  %2326 = vmatpush.bf16.msra.mxu1 %v3829_v4 }
 0x543   : > { %2339 = vmatpush.bf16.msra.mxu2 %v3849_v58 }
 0x546   : > { %2352 = vmatpush.bf16.msra.mxu3 %v3869_v49 }
 0x547   : > { %2340 = vmatpush.bf16.msra.mxu2 %v3833_v10 }
 0x54a   : > { %2353 = vmatpush.bf16.msra.mxu3 %v3853_v63 }
 0x54e   : > { %2354 = vmatpush.bf16.msra.mxu3 %v3837_v14 }
 0x5ab   : > { %v2073_v56 = vpop.xlane.xlu0 %2072 }
 0x5ac   : > { %v2076_v62 = vmul.f32 %v2073_v56, %v5048_v11 }
 0x5ae   : > { %v2078_v9 = vadd.f32 1e-05, %v2076_v62 }
 0x5b0   : > { %4490 = vrsqrt.f32 %v2078_v9  ;;  %vm2086_vm8 = vweird.f32 %v2078_v9 }
 0x5b3   : > { %v2075_v15 = vpop.xlane.xlu1 %2074 }
 0x5b4   : > { %v2077_v16 = vmul.f32 %v2075_v15, %v5048_v11 }
 0x5b6   : > { %v4491_v17 = vpop.eup %4490  ;;  %v2079_v18 = vadd.f32 1e-05, %v2077_v16 }
 0x5b7   : > { %v2081_v19 = vmul.f32 %v4491_v17, %v2078_v9  ;;  %vm2087_vm7 = vweird.f32 %v4491_v17 }
 0x5b8   : > { %4492 = vrsqrt.f32 %v2079_v18  ;;  %vm2088_vm9 = vmor %vm2086_vm8, %vm2087_vm7  ;;  %vm2096_vm11 = vweird.f32 %v2079_v18 }
 0x5b9   : > { %v2082_v20 = vmul.f32 %v4491_v17, %v2081_v19 }
 0x5bb   : > { %v2083_v21 = vmul.f32 0.5, %v2082_v20 }
 0x5bd   : > { %v2084_v22 = vsub.f32 1.5, %v2083_v21 }
 0x5be   : > { %v4493_v23 = vpop.eup %4492 }
 0x5bf   : > { %v2085_v24 = vmul.f32 %v4491_v17, %v2084_v22  ;;  %v2091_v25 = vmul.f32 %v4493_v23, %v2079_v18  ;;  %vm2097_vm10 = vweird.f32 %v4493_v23 }
 0x5c0   : > { %vm2098_vm12 = vmor %vm2096_vm11, %vm2097_vm10 }
 0x5c1   : > { %v2092_v26 = vmul.f32 %v4493_v23, %v2091_v25  ;;  %v2089_v27 = vsel %vm2088_vm9, %v4491_v17, %v2085_v24 }
 0x5c2   : > { %v2100_v31 = vmul.f32 %v2089_v27, %v5051_v32 }
 0x5c3   : > { %v2093_v28 = vmul.f32 0.5, %v2092_v26 }
 0x5c4   : > { %v2103_v37 = vmul.f32 %v2102_v12, %v2100_v31 }
 0x5c5   : > { %v2094_v30 = vsub.f32 1.5, %v2093_v28 }
 0x5c6   : > { %v5130_v40 = vadd.f32 %v2105_v38, %v2103_v37 }
 0x5c7   : > { %v2095_v33 = vmul.f32 %v4493_v23, %v2094_v30 }
 0x5c9   : > { %v2099_v34 = vsel %vm2098_vm12, %v4493_v23, %v2095_v33 }
 0x5ca   : > { %v2101_v35 = vmul.f32 %v2099_v34, %v5056_v36  ;;  %v2141_v36 = vperm.slane %v5043_v5, 0  ;;  %v2143_v5 = vperm.slane %v5148_v48, 0 }
 0x5cc   : > { %v2104_v39 = vmul.f32 %v2102_v12, %v2101_v35 }
 0x5ce   : > { %v5132_v41 = vadd.f32 %v2105_v38, %v2104_v39 }
 0x5d0   : > { %v2108_v32 = vpack.c.bf16 %v5132_v41, %v5130_v40 }
 0x5d2   : > { %2313 = vmatmul.bf16.vlgmr.msra.gmra.mxu0 %v2108_v32  ;;  %2327 = vmatmul.bf16.vlgmr.msra.gmra.mxu1 %v2108_v32 }
 0x5d3   : > { %2341 = vmatmul.bf16.vlgmr.msra.gmra.mxu2 %v2108_v32  ;;  %2355 = vmatmul.bf16.vlgmr.msra.gmra.mxu3 %v2108_v32 }
 0x64f   : > { %v2314_v44 = vpop.f32.mrf.mxu0  ;;  %v2328_v45 = vpop.f32.mrf.mxu1 }
 0x650   : > { %v5141_v46 = vadd.f32 %v2314_v44, %v2141_v36  ;;  %v5145_v47 = vadd.f32 %v2328_v45, %v2142_v43 }
 0x652   : > { %v5151_v49 = vmul.f32 0.70710677, %v5141_v46  ;;  %v5154_v29 = vmul.f32 0.70710677, %v5145_v47 }
 0x654   : > { %v2377_v50 = vmul.f32 %v5151_v49, %v5151_v49  ;;  %v2417_v51 = vmul.f32 %v5154_v29, %v5154_v29 }
 0x656   : > { %v5164_v53 = vmin.f32 %v2377_v50, 16.0  ;;  %v5166_v54 = vmin.f32 %v2417_v51, 16.0  ;;  %v2342_v55 = vpop.f32.mrf.mxu2  ;;  %v2356_v59 = vpop.f32.mrf.mxu3 }
 0x657   : > { %v5170_v56 = vadd.f32 %v2342_v55, %v2143_v5  ;;  %v5184_v3 = vadd.f32 %v2356_v59, %v2144_v57  ;;  %v2316_v17 = vpop.f32.mrf.mxu0 }
 0x658   : > { %v2390_v58 = vmul.f32 3.8918573e-05, %v5164_v53  ;;  %v2379_v60 = vmul.f32 2.1237322e-06, %v5164_v53  ;;  %v2430_v61 = vmul.f32 3.8918573e-05, %v5166_v54  ;;  %v5200_v24 = vadd.f32 %v2316_v17, %v2141_v36 }
 0x659   : > { %v5177_v62 = vmul.f32 0.70710677, %v5170_v56  ;;  %v2419_v0 = vmul.f32 2.1237322e-06, %v5166_v54  ;;  %v5192_v15 = vmul.f32 0.70710677, %v5184_v3 }
 0x65a   : > { %v2391_v63 = vadd.f32 0.001143296, %v2390_v58  ;;  %v2431_v1 = vadd.f32 0.001143296, %v2430_v61  ;;  %v2380_v6 = vadd.f32 0.00028619796, %v2379_v60  ;;  %v2330_v61 = vpop.f32.mrf.mxu1 }
 0x65b   : > { %v2457_v2 = vmul.f32 %v5177_v62, %v5177_v62  ;;  %v2420_v10 = vadd.f32 0.00028619796, %v2419_v0  ;;  %v2497_v23 = vmul.f32 %v5192_v15, %v5192_v15  ;;  %v5208_v34 = vmul.f32 0.70710677, %v5200_v24 }
 0x65c   : > { %v2392_v4 = vmul.f32 %v2391_v63, %v5164_v53  ;;  %v2432_v7 = vmul.f32 %v2431_v1, %v5166_v54  ;;  %v2381_v18 = vmul.f32 %v2380_v6, %v5164_v53  ;;  %v2331_v6 = vadd.f32 %v2330_v61, %v2142_v43 }
 0x65d   : > { %v5188_v8 = vmin.f32 %v2457_v2, 16.0  ;;  %v2421_v22 = vmul.f32 %v2420_v10, %v5166_v54  ;;  %v5205_v33 = vmin.f32 %v2497_v23, 16.0  ;;  %v2537_v50 = vmul.f32 %v5208_v34, %v5208_v34 }
 0x65e   : > { %v2393_v9 = vadd.f32 0.014752088, %v2392_v4  ;;  %v2433_v13 = vadd.f32 0.014752088, %v2432_v7  ;;  %v2382_v27 = vadd.f32 0.0036580483, %v2381_v18  ;;  %v2344_v43 = vpop.f32.mrf.mxu2 }
 0x65f   : > { %v2470_v14 = vmul.f32 3.8918573e-05, %v5188_v8  ;;  %v2422_v31 = vadd.f32 0.0036580483, %v2421_v22  ;;  %v2459_v12 = vmul.f32 2.1237322e-06, %v5188_v8 }
 0x660   : > { %v2394_v16 = vmul.f32 %v2393_v9, %v5164_v53  ;;  %v2434_v19 = vmul.f32 %v2433_v13, %v5166_v54  ;;  %v2383_v39 = vmul.f32 %v2382_v27, %v5164_v53  ;;  %v2510_v45 = vmul.f32 3.8918573e-05, %v5205_v33 }
 0x661   : > { %v2471_v20 = vadd.f32 0.001143296, %v2470_v14  ;;  %v2423_v32 = vmul.f32 %v2422_v31, %v5166_v54  ;;  %v2460_v36 = vadd.f32 0.00028619796, %v2459_v12  ;;  %v5222_v0 = vmin.f32 %v2537_v50, 16.0 }
 0x662   : > { %v2395_v21 = vadd.f32 0.112945676, %v2394_v16  ;;  %v2435_v26 = vadd.f32 0.112945676, %v2434_v19  ;;  %v2384_v58 = vadd.f32 0.05243302, %v2383_v39  ;;  %v5247_v31 = vadd.f32 %v2344_v43, %v2143_v5 }
 0x663   : > { %v2472_v28 = vmul.f32 %v2471_v20, %v5188_v8  ;;  %v2424_v59 = vadd.f32 0.05243302, %v2423_v32  ;;  %v2461_v60 = vmul.f32 %v2460_v36, %v5188_v8  ;;  %v2511_v63 = vadd.f32 0.001143296, %v2510_v45 }
 0x664   : > { %v2396_v25 = vmul.f32 %v2395_v21, %v5164_v53  ;;  %v2436_v37 = vmul.f32 %v2435_v26, %v5166_v54  ;;  %v2499_v2 = vmul.f32 2.1237322e-06, %v5205_v33  ;;  %v2385_v7 = vmul.f32 %v2384_v58, %v5164_v53 }
 0x665   : > { %v2473_v38 = vadd.f32 0.014752088, %v2472_v28  ;;  %v2425_v9 = vmul.f32 %v2424_v59, %v5166_v54  ;;  %v2462_v10 = vadd.f32 0.0036580483, %v2461_v60  ;;  %v2512_v13 = vmul.f32 %v2511_v63, %v5205_v33 }
 0x666   : > { %v2397_v30 = vadd.f32 0.4994258, %v2396_v25  ;;  %v2437_v51 = vadd.f32 0.4994258, %v2436_v37  ;;  %v2539_v14 = vmul.f32 2.1237322e-06, %v5222_v0 }
 0x667   : > { %v2474_v55 = vmul.f32 %v2473_v38, %v5188_v8  ;;  %v2550_v16 = vmul.f32 3.8918573e-05, %v5222_v0  ;;  %v2500_v18 = vadd.f32 0.00028619796, %v2499_v2  ;;  %v5238_v42 = vmul.f32 0.70710677, %v2331_v6 }
 0x668   : > { %v2398_v35 = vmul.f32 %v2397_v30, %v5164_v53  ;;  %v2438_v1 = vmul.f32 %v2437_v51, %v5166_v54  ;;  %v2386_v21 = vadd.f32 0.18741608, %v2385_v7  ;;  %v2426_v22 = vadd.f32 0.18741608, %v2425_v9 }
 0x669   : > { %v2475_v4 = vadd.f32 0.112945676, %v2474_v55  ;;  %v2463_v23 = vmul.f32 %v2462_v10, %v5188_v8  ;;  %v2513_v25 = vadd.f32 0.014752088, %v2512_v13  ;;  %v2540_v26 = vadd.f32 0.00028619796, %v2539_v14 }
 0x66a   : > { %v5214_v44 = vadd.f32 1.0, %v2398_v35  ;;  %v5233_v17 = vadd.f32 1.0, %v2438_v1  ;;  %v2551_v27 = vadd.f32 0.001143296, %v2550_v16  ;;  %v2501_v30 = vmul.f32 %v2500_v18, %v5205_v33 }
 0x66b   : > { %v2476_v20 = vmul.f32 %v2475_v4, %v5188_v8  ;;  %v2541_v35 = vmul.f32 %v2540_v26, %v5222_v0  ;;  %v2577_v38 = vmul.f32 %v5238_v42, %v5238_v42  ;;  %v2387_v39 = vmul.f32 %v2386_v21, %v5164_v53 }
 0x66c   : > { %4494 = vrcp.f32 %v5214_v44  ;;  %v2552_v37 = vmul.f32 %v2551_v27, %v5222_v0  ;;  %v2464_v32 = vadd.f32 0.05243302, %v2463_v23  ;;  %v2427_v36 = vmul.f32 %v2426_v22, %v5166_v54  ;;  %v4304_v23 = vld [vmem:[%s4770_s22 + $0x38] sm:$0xff] }
 0x66d   : > { %4496 = vrcp.f32 %v5233_v17  ;;  %v2477_v12 = vadd.f32 0.4994258, %v2476_v20  ;;  %v2514_v45 = vmul.f32 %v2513_v25, %v5205_v33  ;;  %v5256_v51 = vmin.f32 %v2577_v38, 16.0  ;;  %v4312_v25 = vld [vmem:[%s4770_s22 + $0x78] sm:$0xff]  ;;  %2974 = vmatpush.bf16.msrb.mxu0 %v4304_v23  ;;  %v4310_v23 = vld [vmem:[%s4770_s22 + $0x68] sm:$0xff] }
 0x66e   : > { %v2553_v50 = vadd.f32 0.014752088, %v2552_v37  ;;  %v2542_v5 = vadd.f32 0.0036580483, %v2541_v35  ;;  %v5259_v55 = vmul.f32 0.70710677, %v5247_v31  ;;  %v2465_v63 = vmul.f32 %v2464_v32, %v5188_v8  ;;  %2988 = vmatpush.bf16.msrb.mxu1 %v4312_v25 }
 0x66f   : > { %v5262_v58 = vmul.f32 0.5, %v5141_v46  ;;  %v5265_v59 = vmul.f32 0.5, %v5145_v47  ;;  %v2478_v53 = vmul.f32 %v2477_v12, %v5188_v8  ;;  %v2502_v60 = vadd.f32 0.0036580483, %v2501_v30 }
 0x670   : > { %v2388_v61 = vadd.f32 1.1283791, %v2387_v39  ;;  %v2554_v1 = vmul.f32 %v2553_v50, %v5222_v0  ;;  %v2579_v2 = vmul.f32 2.1237322e-06, %v5256_v51  ;;  %v5273_v4 = vadd.f32 1.1283791, %v2427_v36 }
 0x671   : > { %v2515_v46 = vadd.f32 0.112945676, %v2514_v45  ;;  %v5276_v47 = vmul.f32 0.5, %v5200_v24  ;;  %v5278_v7 = vmul.f32 0.5, %v2331_v6  ;;  %v2409_v10 = vand.u32 2147483647, %v5214_v44 }
 0x672   : > { %v5235_v19 = vpop.eup %4494  ;;  %v2543_v13 = vmul.f32 %v2542_v5, %v5222_v0  ;;  %v2617_v14 = vmul.f32 %v5259_v55, %v5259_v55  ;;  %v5285_v16 = vadd.f32 1.0, %v2478_v53  ;;  %v2503_v18 = vmul.f32 %v2502_v60, %v5205_v33  ;;  %v4303_v50 = vld [vmem:[%s4770_s22 + $0x30] sm:$0xff] }
 0x673   : > { %v2401_v28 = vmul.f32 %v5235_v19, %v5214_v44  ;;  %v5268_v54 = vpop.eup %4496  ;;  %v2555_v20 = vadd.f32 0.112945676, %v2554_v1  ;;  %v2580_v43 = vadd.f32 0.00028619796, %v2579_v2  ;;  %v5289_v24 = vmul.f32 %v2388_v61, %v5151_v49  ;;  %v4328_v1 = vld [vmem:[%s4770_s22 + $0xf8] sm:$0xff]  ;;  %2975 = vmatpush.bf16.msrb.mxu0 %v4303_v50 }
 0x674   : > { %v2411_v6 = vand.u32 2147483648, %v5214_v44  ;;  %v2441_v21 = vmul.f32 %v5268_v54, %v5233_v17  ;;  %v2466_v22 = vadd.f32 0.18741608, %v2465_v63  ;;  %vm2406_vm13 = vweird.f32 %v5235_v19  ;;  %v4320_v63 = vld [vmem:[%s4770_s22 + $0xb8] sm:$0xff]  ;;  %3016 = vmatpush.bf16.msrb.mxu3 %v4328_v1  ;;  %v4326_v1 = vld [vmem:[%s4770_s22 + $0xe8] sm:$0xff] }
 0x675   : > { %v2402_v48 = vsub.f32 1.0, %v2401_v28  ;;  %v2516_v26 = vmul.f32 %v2515_v46, %v5205_v33  ;;  %v2556_v27 = vmul.f32 %v2555_v20, %v5222_v0  ;;  %v2590_v28 = vmul.f32 3.8918573e-05, %v5256_v51  ;;  %3002 = vmatpush.bf16.msrb.mxu2 %v4320_v63 }
 0x676   : > { %v2544_v30 = vadd.f32 0.05243302, %v2543_v13  ;;  %v2581_v12 = vmul.f32 %v2580_v43, %v5256_v51  ;;  %v5302_v35 = vmin.f32 %v2617_v14, 16.0  ;;  %4498 = vrcp.f32 %v5285_v16  ;;  %v2358_v13 = vpop.f32.mrf.mxu3  ;;  %v4302_v43 = vld [vmem:[%s4770_s22 + $0x28] sm:$0xff] }
 0x677   : > { %v2403_v9 = vmul.f32 %v5235_v19, %v2402_v48  ;;  %v2504_v37 = vadd.f32 0.05243302, %v2503_v18  ;;  %v2557_v38 = vadd.f32 0.4994258, %v2556_v27  ;;  %v2591_v39 = vadd.f32 0.001143296, %v2590_v28  ;;  %2976 = vmatpush.bf16.msrb.mxu0 %v4302_v43 }
 0x678   : > { %vm2405_vm14 = vweird.f32 %v5214_v44  ;;  %vm5306_vm15 = vcmp.eq.f32.partialorder %v2409_v10, 8.507059e+37  ;;  %v2412_v36 = vor.u32 1.1754944e-38, %v2411_v6  ;;  %v2442_v45 = vsub.f32 1.0, %v2441_v21  ;;  %v4311_v48 = vld [vmem:[%s4770_s22 + $0x70] sm:$0xff] }
 0x679   : > { %v2404_v49 = vadd.f32 %v5235_v19, %v2403_v9  ;;  %vm5314_vm0 = vmor %vm2405_vm14, %vm2406_vm13  ;;  %v2517_v53 = vadd.f32 0.4994258, %v2516_v26  ;;  %v2558_v60 = vmul.f32 %v2557_v38, %v5222_v0  ;;  %v2592_v61 = vmul.f32 %v2591_v39, %v5256_v51  ;;  %2989 = vmatpush.bf16.msrb.mxu1 %v4311_v48 }
 0x67a   : > { %v2619_v44 = vmul.f32 2.1237322e-06, %v5302_v35  ;;  %vm2445_vm1 = vweird.f32 %v5233_v17  ;;  %v2467_v46 = vmul.f32 %v2466_v22, %v5188_v8  ;;  %v2545_v9 = vmul.f32 %v2544_v30, %v5222_v0  ;;  %v4327_v30 = vld [vmem:[%s4770_s22 + $0xf0] sm:$0xff] }
 0x67b   : > { %v2408_v2 = vsel %vm5314_vm0, %v5235_v19, %v2404_v49  ;;  %v2582_v10 = vadd.f32 0.0036580483, %v2581_v12  ;;  %v2505_v14 = vmul.f32 %v2504_v37, %v5205_v33  ;;  %v5330_v18 = vadd.f32 1.0, %v2558_v60  ;;  %v4319_v49 = vld [vmem:[%s4770_s22 + $0xb0] sm:$0xff]  ;;  %3017 = vmatpush.bf16.msrb.mxu3 %v4327_v30  ;;  %v4317_v30 = vld [vmem:[%s4770_s22 + $0xa0] sm:$0xff] }
 0x67c   : > { %v2593_v20 = vadd.f32 0.014752088, %v2592_v61  ;;  %v2630_v19 = vmul.f32 3.8918573e-05, %v5302_v35  ;;  %v2443_v8 = vmul.f32 %v5268_v54, %v2442_v45  ;;  %v2449_v6 = vand.u32 2147483647, %v5233_v17  ;;  %v5338_v25 = vpop.eup %4498  ;;  %3003 = vmatpush.bf16.msrb.mxu2 %v4319_v49 }
 0x67d   : > { %v2451_v21 = vand.u32 2147483648, %v5233_v17  ;;  %v2620_v22 = vadd.f32 0.00028619796, %v2619_v44  ;;  %v2413_v26 = vsel %vm5306_vm15, %v2412_v36, %v2408_v2  ;;  %v2518_v27 = vmul.f32 %v2517_v53, %v5205_v33  ;;  %2990 = vmatpush.bf16.msrb.mxu1 %v4310_v23  ;;  %v4301_v36 = vld [vmem:[%s4770_s22 + $0x20] sm:$0xff] }
 0x67e   : > { %4500 = vrcp.f32 %v5330_v18  ;;  %v5346_v28 = vadd.f32 %v2358_v13, %v2144_v57  ;;  %v5350_v12 = vadd.f32 1.1283791, %v2467_v46  ;;  %v2546_v37 = vadd.f32 0.18741608, %v2545_v9  ;;  %v4309_v45 = vld [vmem:[%s4770_s22 + $0x60] sm:$0xff]  ;;  %2977 = vmatpush.bf16.msrb.mxu0 %v4301_v36 }
 0x67f   : > { %v2583_v38 = vmul.f32 %v2582_v10, %v5256_v51  ;;  %v2594_v39 = vmul.f32 %v2593_v20, %v5256_v51  ;;  %vm2446_vm2 = vweird.f32 %v5268_v54  ;;  %v5355_v32 = vadd.f32 0.18741608, %v2505_v14  ;;  %3018 = vmatpush.bf16.msrb.mxu3 %v4326_v1 }
 0x680   : > { %v2621_v52 = vmul.f32 %v2620_v22, %v5302_v35  ;;  %v2631_v57 = vadd.f32 0.001143296, %v2630_v19  ;;  %v5361_v50 = vmul.f32 %v2413_v26, %v5289_v24  ;;  %v5364_v48 = vadd.f32 %v5268_v54, %v2443_v8  ;;  %v4318_v24 = vld [vmem:[%s4770_s22 + $0xa8] sm:$0xff]  ;;  %vm5391_vm3 = vmor %vm2445_vm1, %vm2446_vm2  ;;  %v4300_v8 = vld [vmem:[%s4770_s22 + $0x18] sm:$0xff] }
 0x681   : > { %v2481_v5 = vmul.f32 %v5338_v25, %v5285_v16  ;;  %v2595_v53 = vadd.f32 0.112945676, %v2594_v39  ;;  %v5368_v60 = vor.u32 1.1754944e-38, %v2451_v21  ;;  %v5370_v61 = vadd.f32 1.0, %v2518_v27  ;;  %2991 = vmatpush.bf16.msrb.mxu1 %v4309_v45  ;;  %3004 = vmatpush.bf16.msrb.mxu2 %v4318_v24  ;;  %v4308_v21 = vld [vmem:[%s4770_s22 + $0x58] sm:$0xff] }
 0x682   : > { %v2632_v44 = vmul.f32 %v2631_v57, %v5302_v35  ;;  %v5374_v63 = vmul.f32 0.70710677, %v5346_v28  ;;  %v2489_v2 = vand.u32 2147483647, %v5285_v16  ;;  %v2547_v46 = vmul.f32 %v2546_v37, %v5222_v0  ;;  %2978 = vmatpush.bf16.msrb.mxu0 %v4300_v8 }
 0x683   : > { %v2584_v9 = vadd.f32 0.05243302, %v2583_v38  ;;  %v2596_v10 = vmul.f32 %v2595_v53, %v5256_v51  ;;  %v5385_v14 = vmul.f32 %v5273_v4, %v5154_v29  ;;  %v2622_v19 = vadd.f32 0.0036580483, %v2621_v52  ;;  %v4307_v53 = vld [vmem:[%s4770_s22 + $0x50] sm:$0xff] }
 0x684   : > { %v5381_v13 = vpop.eup %4500  ;;  %v2633_v0 = vadd.f32 0.014752088, %v2632_v44  ;;  %v2657_v43 = vmul.f32 %v5374_v63, %v5374_v63  ;;  %v3950_v29 = vclamps-f32 %v5361_v50, 1.0  ;;  %v2448_v17 = vsel %vm5391_vm3, %v5268_v54, %v5364_v48  ;;  %v4297_v54 = vld [vmem:[%s4770_s22] sm:$0xff] }
 0x685   : > { %v2482_v4 = vsub.f32 1.0, %v2481_v5  ;;  %v2561_v22 = vmul.f32 %v5381_v13, %v5330_v18  ;;  %vm5406_vm4 = vcmp.eq.f32.partialorder %v2449_v6, 8.507059e+37  ;;  %4502 = vrcp.f32 %v5370_v61  ;;  %v4325_v6 = vld [vmem:[%s4770_s22 + $0xe0] sm:$0xff]  ;;  %2992 = vmatpush.bf16.msrb.mxu1 %v4308_v21  ;;  %3005 = vmatpush.bf16.msrb.mxu2 %v4317_v30  ;;  %v4299_v5 = vld [vmem:[%s4770_s22 + $0x10] sm:$0xff] }
 0x686   : > { %v2597_v26 = vadd.f32 0.4994258, %v2596_v10  ;;  %v2634_v27 = vmul.f32 %v2633_v0, %v5302_v35  ;;  %v5412_v49 = vmin.f32 %v2657_v43, 16.0  ;;  %v2548_v37 = vadd.f32 1.1283791, %v2547_v46  ;;  %3019 = vmatpush.bf16.msrb.mxu3 %v4325_v6  ;;  %v4316_v0 = vld [vmem:[%s4770_s22 + $0x98] sm:$0xff]  ;;  %2979 = vmatpush.bf16.msrb.mxu0 %v4299_v5 }
 0x687   : > { %v2562_v38 = vsub.f32 1.0, %v2561_v22  ;;  %v2571_v39 = vand.u32 2147483648, %v5330_v18  ;;  %v2585_v52 = vmul.f32 %v2584_v9, %v5256_v51  ;;  %v2623_v36 = vmul.f32 %v2622_v19, %v5302_v35  ;;  %v4324_v22 = vld [vmem:[%s4770_s22 + $0xd8] sm:$0xff]  ;;  %v4305_v48 = vld [vmem:[%s4770_s22 + $0x40] sm:$0xff] }
 0x688   : > { %v2598_v57 = vmul.f32 %v2597_v26, %v5256_v51  ;;  %v2635_v45 = vadd.f32 0.112945676, %v2634_v27  ;;  %v2659_v50 = vmul.f32 2.1237322e-06, %v5412_v49  ;;  %vm2566_vm5 = vweird.f32 %v5381_v13 }
 0x689   : > { %v2563_v44 = vmul.f32 %v5381_v13, %v2562_v38  ;;  %v2569_v24 = vand.u32 2147483647, %v5330_v18  ;;  %v2670_v1 = vmul.f32 3.8918573e-05, %v5412_v49  ;;  %v2483_v46 = vmul.f32 %v5338_v25, %v2482_v4  ;;  %2993 = vmatpush.bf16.msrb.mxu1 %v4307_v53  ;;  %3006 = vmatpush.bf16.msrb.mxu2 %v4316_v0  ;;  %v4298_v38 = vld [vmem:[%s4770_s22 + $0x8] sm:$0xff] }
 0x68a   : > { %v5428_v9 = vadd.f32 1.0, %v2598_v57  ;;  %v2636_v10 = vmul.f32 %v2635_v45, %v5302_v35  ;;  %v2660_v19 = vadd.f32 0.00028619796, %v2659_v50  ;;  %vm2565_vm6 = vweird.f32 %v5330_v18  ;;  %3020 = vmatpush.bf16.msrb.mxu3 %v4324_v22  ;;  %v4315_v45 = vld [vmem:[%s4770_s22 + $0x90] sm:$0xff]  ;;  %2980 = vmatpush.bf16.msrb.mxu0 %v4298_v38 }
 0x68b   : > { %v2564_v43 = vadd.f32 %v5381_v13, %v2563_v44  ;;  %v2572_v8 = vor.u32 1.1754944e-38, %v2571_v39  ;;  %v2671_v21 = vadd.f32 0.001143296, %v2670_v1  ;;  %v5435_v26 = vpop.eup %4502  ;;  %v2549_v4 = vmul.f32 %v2548_v37, %v5208_v34  ;;  %vm5440_vm7 = vmor %vm2565_vm6, %vm2566_vm5  ;;  %v4306_v39 = vld [vmem:[%s4770_s22 + $0x48] sm:$0xff]  ;;  %v4323_v50 = vld [vmem:[%s4770_s22 + $0xd0] sm:$0xff] }
 0x68c   : > { %v2586_v30 = vadd.f32 0.18741608, %v2585_v52  ;;  %4504 = vrcp.f32 %v5428_v9  ;;  %v2624_v18 = vadd.f32 0.05243302, %v2623_v36  ;;  %vm2570_vm8 = vcmp.eq.f32.partialorder %v2569_v24, 8.507059e+37 }
 0x68d   : > { %v2568_v34 = vsel %vm5440_vm7, %v5381_v13, %v2564_v43  ;;  %v2637_v37 = vadd.f32 0.4994258, %v2636_v10  ;;  %v2661_v6 = vmul.f32 %v2660_v19, %v5412_v49  ;;  %vm2486_vm9 = vweird.f32 %v5338_v25  ;;  %2994 = vmatpush.bf16.msrb.mxu1 %v4306_v39  ;;  %3007 = vmatpush.bf16.msrb.mxu2 %v4315_v45  ;;  %v4314_v43 = vld [vmem:[%s4770_s22 + $0x88] sm:$0xff] }
 0x68e   : > { %v2491_v52 = vand.u32 2147483648, %v5285_v16  ;;  %v2573_v57 = vsel %vm2570_vm8, %v2572_v8, %v2568_v34  ;;  %v2672_v36 = vmul.f32 %v2671_v21, %v5412_v49  ;;  %v2697_v5 = vadd.f32 1.0, %v3950_v29  ;;  %3021 = vmatpush.bf16.msrb.mxu3 %v4323_v50  ;;  %v4322_v8 = vld [vmem:[%s4770_s22 + $0xc8] sm:$0xff]  ;;  %2981 = vmatpush.bf16.msrb.mxu0 %v4297_v54 }
 0x68f   : > { %v2453_v13 = vsel %vm5406_vm4, %v5368_v60, %v2448_v17  ;;  %v2574_v53 = vmul.f32 %v2573_v57, %v2549_v4  ;;  %v2638_v44 = vmul.f32 %v2637_v37, %v5302_v35  ;;  %v2484_v24 = vadd.f32 %v5338_v25, %v2483_v46  ;;  %v4321_v57 = vld [vmem:[%s4770_s22 + $0xc0] sm:$0xff] }
 0x690   : > { %v2587_v1 = vmul.f32 %v2586_v30, %v5256_v51  ;;  %v2625_v10 = vmul.f32 %v2624_v18, %v5302_v35  ;;  %v2673_v29 = vadd.f32 0.014752088, %v2672_v36  ;;  %vm2485_vm10 = vweird.f32 %v5285_v16 }
 0x691   : > { %v3954_v60 = vclamps-f32 %v2574_v53, 1.0  ;;  %v5471_v20 = vadd.f32 1.0, %v2638_v44  ;;  %v2662_v17 = vadd.f32 0.0036580483, %v2661_v6  ;;  %vm5475_vm11 = vcmp.eq.f32.partialorder %v2489_v2, 8.507059e+37  ;;  %vm5487_vm12 = vmor %vm2485_vm10, %vm2486_vm9  ;;  %2995 = vmatpush.bf16.msrb.mxu1 %v4305_v48  ;;  %3008 = vmatpush.bf16.msrb.mxu2 %v4314_v43 }
 0x692   : > { %v4505_v23 = vpop.eup %4504  ;;  %v2492_v46 = vor.u32 1.1754944e-38, %v2491_v52  ;;  %v2521_v19 = vmul.f32 %v5435_v26, %v5370_v61  ;;  %v2674_v0 = vmul.f32 %v2673_v29, %v5412_v49  ;;  %v2454_v21 = vmul.f32 %v2453_v13, %v5385_v14  ;;  %3022 = vmatpush.bf16.msrb.mxu3 %v4322_v8  ;;  %v4313_v52 = vld [vmem:[%s4770_s22 + $0x80] sm:$0xff] }
 0x693   : > { %v2701_v16 = vadd.f32 1.0, %v3954_v60  ;;  %v2601_v2 = vmul.f32 %v4505_v23, %v5428_v9  ;;  %4506 = vrcp.f32 %v5471_v20  ;;  %v2705_v4 = vmul.f32 %v2697_v5, %v5262_v58 }
 0x694   : > { %v2488_v14 = vsel %vm5487_vm12, %v5338_v25, %v2484_v24  ;;  %v2588_v27 = vadd.f32 1.1283791, %v2587_v1  ;;  %v2626_v30 = vadd.f32 0.18741608, %v2625_v10  ;;  %v2663_v39 = vmul.f32 %v2662_v17, %v5412_v49 }
 0x695   : > { %v2709_v18 = vmul.f32 %v2701_v16, %v5276_v47  ;;  %v2602_v38 = vsub.f32 1.0, %v2601_v2  ;;  %v2675_v34 = vadd.f32 0.112945676, %v2674_v0  ;;  %v2522_v37 = vsub.f32 1.0, %v2521_v19  ;;  %3009 = vmatpush.bf16.msrb.mxu2 %v4313_v52 }
 0x696   : > { %v2609_v6 = vand.u32 2147483647, %v5428_v9  ;;  %v2611_v58 = vand.u32 2147483648, %v5428_v9  ;;  %vm2606_vm13 = vweird.f32 %v4505_v23  ;;  %v3951_v50 = vclamps-f32 %v2454_v21, 1.0  ;;  %3023 = vmatpush.bf16.msrb.mxu3 %v4321_v57 }
 0x697   : > { %v2713_v36 = vpack.c.bf16 %v2709_v18, %v2705_v4  ;;  %v2603_v25 = vmul.f32 %v4505_v23, %v2602_v38  ;;  %v2676_v45 = vmul.f32 %v2675_v34, %v5412_v49  ;;  %v2469_v47 = vmul.f32 %v5350_v12, %v5177_v62 }
 0x698   : > { %v2493_v5 = vsel %vm5475_vm11, %v2492_v46, %v2488_v14  ;;  %v2507_v13 = vmul.f32 %v5355_v32, %v5205_v33  ;;  %vm2525_vm14 = vweird.f32 %v5370_v61  ;;  %vm2605_vm15 = vweird.f32 %v5428_v9 }
 0x699   : > { %v4507_v53 = vpop.eup %4506  ;;  %v2604_v44 = vadd.f32 %v4505_v23, %v2603_v25  ;;  %v2664_v24 = vadd.f32 0.05243302, %v2663_v39  ;;  %v2677_v1 = vadd.f32 0.4994258, %v2676_v45  ;;  %2982 = vmatmul.bf16.vlgmr.msrb.gmra.mxu0 %v2713_v36  ;;  %v2523_v10 = vmul.f32 %v5435_v26, %v2522_v37  ;;  %vm2607_vm0 = vmor %vm2605_vm15, %vm2606_vm13 }
 0x69a   : > { %v2612_v62 = vor.u32 1.1754944e-38, %v2611_v58  ;;  %v2627_v12 = vmul.f32 %v2626_v30, %v5302_v35  ;;  %v2641_v33 = vmul.f32 %v4507_v53, %v5471_v20  ;;  %v2589_v32 = vmul.f32 %v2588_v27, %v5238_v42 }
 0x69b   : > { %v2608_v29 = vsel %vm2607_vm0, %v4505_v23, %v2604_v44  ;;  %vm2610_vm1 = vcmp.eq.f32.partialorder %v2609_v6, 8.507059e+37  ;;  %v2678_v54 = vmul.f32 %v2677_v1, %v5412_v49  ;;  %v2698_v9 = vadd.f32 1.0, %v3951_v50 }
 0x69c   : > { %v2494_v48 = vmul.f32 %v2493_v5, %v2469_v47  ;;  %v2613_v60 = vsel %vm2610_vm1, %v2612_v62, %v2608_v29  ;;  %v2642_v17 = vsub.f32 1.0, %v2641_v33  ;;  %v2651_v46 = vand.u32 2147483648, %v5471_v20 }
 0x69d   : > { %v2614_v51 = vmul.f32 %v2613_v60, %v2589_v32  ;;  %v2665_v19 = vmul.f32 %v2664_v24, %v5412_v49  ;;  %v2679_v0 = vadd.f32 1.0, %v2678_v54  ;;  %v2628_v43 = vadd.f32 1.1283791, %v2627_v12 }
 0x69e   : > { %v2643_v35 = vmul.f32 %v4507_v53, %v2642_v17  ;;  %vm2646_vm2 = vweird.f32 %v4507_v53  ;;  %v2649_v8 = vand.u32 2147483647, %v5471_v20  ;;  %v2524_v42 = vadd.f32 %v5435_v26, %v2523_v10 }
 0x69f   : > { %vm2526_vm3 = vweird.f32 %v5435_v26  ;;  %v3955_v23 = vclamps-f32 %v2614_v51, 1.0  ;;  %4508 = vrcp.f32 %v2679_v0  ;;  %v2529_v21 = vand.u32 2147483647, %v5370_v61 }
 0x6a0   : > { %v2531_v22 = vand.u32 2147483648, %v5370_v61  ;;  %v2644_v16 = vadd.f32 %v4507_v53, %v2643_v35  ;;  %vm2645_vm4 = vweird.f32 %v5471_v20  ;;  %v3952_v2 = vclamps-f32 %v2494_v48, 1.0  ;;  %vm5528_vm6 = vmor %vm2525_vm14, %vm2526_vm3 }
 0x6a1   : > { %v2702_v4 = vadd.f32 1.0, %v3955_v23  ;;  %vm2647_vm5 = vmor %vm2645_vm4, %vm2646_vm2  ;;  %v2652_v14 = vor.u32 1.1754944e-38, %v2651_v46  ;;  %v2666_v27 = vadd.f32 0.18741608, %v2665_v19  ;;  %v2508_v30 = vadd.f32 1.1283791, %v2507_v13 }
 0x6a2   : > { %v2629_v38 = vmul.f32 %v2628_v43, %v5259_v55  ;;  %v2648_v39 = vsel %vm2647_vm5, %v4507_v53, %v2644_v16  ;;  %vm2650_vm7 = vcmp.eq.f32.partialorder %v2649_v8, 8.507059e+37  ;;  %v2706_v34 = vmul.f32 %v2698_v9, %v5265_v59  ;;  %v5546_v43 = vld [vmem:[%s4775_s29] sm:$0xff] }
 0x6a3   : > { %v2528_v20 = vsel %vm5528_vm6, %v5435_v26, %v2524_v42  ;;  %v2710_v37 = vmul.f32 %v2702_v4, %v5278_v7  ;;  %v2653_v6 = vsel %vm2650_vm7, %v2652_v14, %v2648_v39  ;;  %v2532_v58 = vor.u32 1.1754944e-38, %v2531_v22 }
 0x6a4   : > { %v2654_v52 = vmul.f32 %v2653_v6, %v2629_v38  ;;  %v2699_v57 = vadd.f32 1.0, %v3952_v2  ;;  %vm2530_vm8 = vcmp.eq.f32.partialorder %v2529_v21, 8.507059e+37  ;;  %v2667_v25 = vmul.f32 %v2666_v27, %v5412_v49 }
 0x6a5   : > { %v4509_v61 = vpop.eup %4508  ;;  %v2714_v36 = vpack.c.bf16 %v2710_v37, %v2706_v34  ;;  %v2533_v55 = vsel %vm2530_vm8, %v2532_v58, %v2528_v20  ;;  %v2363_v59 = vmul.f32 0.5, %v5170_v56  ;;  %v2509_v47 = vmul.f32 %v2508_v30, %v5192_v15 }
 0x6a6   : > { %v3956_v45 = vclamps-f32 %v2654_v52, 1.0  ;;  %v2681_v50 = vmul.f32 %v4509_v61, %v2679_v0  ;;  %v2367_v26 = vmul.f32 0.5, %v5247_v31  ;;  %v2668_v44 = vadd.f32 1.1283791, %v2667_v25 }
 0x6a7   : > { %2996 = vmatmul.bf16.vlgmr.msrb.gmra.mxu1 %v2714_v36  ;;  %v2707_v13 = vmul.f32 %v2699_v57, %v2363_v59  ;;  %v2534_v53 = vmul.f32 %v2533_v55, %v2509_v47  ;;  %v2691_v24 = vand.u32 2147483648, %v2679_v0  ;;  %vm2686_vm9 = vweird.f32 %v4509_v61 }
 0x6a8   : > { %v2703_v7 = vadd.f32 1.0, %v3956_v45  ;;  %v2682_v5 = vsub.f32 1.0, %v2681_v50  ;;  %v2689_v49 = vand.u32 2147483647, %v2679_v0  ;;  %vm2685_vm10 = vweird.f32 %v2679_v0 }
 0x6a9   : > { %vm2687_vm11 = vmor %vm2685_vm10, %vm2686_vm9  ;;  %v2692_v56 = vor.u32 1.1754944e-38, %v2691_v24  ;;  %v3953_v33 = vclamps-f32 %v2534_v53, 1.0  ;;  %v2669_v15 = vmul.f32 %v2668_v44, %v5374_v63  ;;  %v2364_v48 = vmul.f32 0.5, %v5184_v3 }
 0x6aa   : > { %v2711_v1 = vmul.f32 %v2703_v7, %v2367_v26  ;;  %v2683_v10 = vmul.f32 %v4509_v61, %v2682_v5  ;;  %vm2690_vm12 = vcmp.eq.f32.partialorder %v2689_v49, 8.507059e+37  ;;  %v2368_v60 = vmul.f32 0.5, %v5346_v28 }
 0x6ab   : > { %v2700_v54 = vadd.f32 1.0, %v3953_v33  ;;  %v2781_v63 = vperm.slane %v5546_v43, 2  ;;  %v3072_v44 = vperm.slane %v5546_v43, 5 }
 0x6ac   : > { %v2715_v62 = vpack.c.bf16 %v2711_v1, %v2707_v13  ;;  %v2684_v12 = vadd.f32 %v4509_v61, %v2683_v10  ;;  %v3075_v10 = vperm.slane %v5546_v43, 6 }
 0x6ad   : > { %v2708_v51 = vmul.f32 %v2700_v54, %v2364_v48 }
 0x6ae   : > { %v2688_v31 = vsel %vm2687_vm11, %v4509_v61, %v2684_v12  ;;  %3010 = vmatmul.bf16.vlgmr.msrb.gmra.mxu2 %v2715_v62 }
 0x6af   : > { %v2693_v32 = vsel %vm2690_vm12, %v2692_v56, %v2688_v31 }
 0x6b0   : > { %v2694_v29 = vmul.f32 %v2693_v32, %v2669_v15 }
 0x6b2   : > { %v3957_v9 = vclamps-f32 %v2694_v29, 1.0 }
 0x6b4   : > { %v2704_v17 = vadd.f32 1.0, %v3957_v9 }
 0x6b6   : > { %v2712_v46 = vmul.f32 %v2704_v17, %v2368_v60 }
 0x6b8   : > { %v2716_v19 = vpack.c.bf16 %v2712_v46, %v2708_v51 }
 0x6ba   : > { %3024 = vmatmul.bf16.vlgmr.msrb.gmra.mxu3 %v2716_v19 }
 0x716   : > { %v2983_v0 = vpop.f32.mrf.mxu0 }
 0x717   : > { %v2984_v35 = vadd.f32 %v2983_v0, %v2781_v63 }
 0x71e   : > { %v2985_v21 = vpop.f32.mrf.mxu0 }
 0x71f   : > { %v2986_v16 = vadd.f32 %v2985_v21, %v2781_v63 }
 0x724   : > { %v2997_v8 = vpop.f32.mrf.mxu1 }
 0x725   : > { %v2998_v23 = vadd.f32 %v2997_v8, %v2984_v35 }
 0x72c   : > { %v2999_v28 = vpop.f32.mrf.mxu1 }
 0x72d   : > { %v3000_v14 = vadd.f32 %v2999_v28, %v2986_v16 }
 0x731   : > { %v3011_v42 = vpop.f32.mrf.mxu2 }
 0x732   : > { %v3012_v22 = vadd.f32 %v3011_v42, %v2998_v23 }
 0x739   : > { %v3013_v4 = vpop.f32.mrf.mxu2 }
 0x73a   : > { %v3014_v30 = vadd.f32 %v3013_v4, %v3000_v14 }
 0x73d   : > { %v3025_v3 = vpop.f32.mrf.mxu3 }
 0x73e   : > { %v3026_v2 = vadd.f32 %v3025_v3, %v3012_v22 }
 0x740   : > { %v3030_v27 = vadd.f32 %v3026_v2, %v5130_v40 }
 0x742   : > { %3032 = vadd.xlane.f32.xlu2 %v3030_v27 }
 0x745   : > { %v3027_v18 = vpop.f32.mrf.mxu3 }
 0x746   : > { %v3028_v38 = vadd.f32 %v3027_v18, %v3014_v30 }
 0x748   : > { %v3031_v39 = vadd.f32 %v3028_v38, %v5132_v41 }
 0x74a   : > { %3034 = vadd.xlane.f32.xlu0 %v3031_v39 }
 0x7b5   : > { %v3033_v34 = vpop.xlane.xlu2 %3032 }
 0x7b6   : > { %v3036_v20 = vmul.f32 %v3033_v34, %v5048_v11 }
 0x7b8   : > { %v3038_v37 = vsub.f32 %v3030_v27, %v3036_v20 }
 0x7ba   : > { %v3040_v6 = vmul.f32 %v3038_v37, %v3038_v37 }
 0x7bc   : > { %3042 = vadd.xlane.f32.xlu1 %v3040_v6 }
 0x7bd   : > { %v3035_v58 = vpop.xlane.xlu0 %3034 }
 0x7be   : > { %v3037_v52 = vmul.f32 %v3035_v58, %v5048_v11 }
 0x7c0   : > { %v3039_v61 = vsub.f32 %v3031_v39, %v3037_v52 }
 0x7c2   : > { %v3041_v57 = vmul.f32 %v3039_v61, %v3039_v61 }
 0x7c4   : > { %3044 = vadd.xlane.f32.xlu2 %v3041_v57 }
 0x82f   : > { %v3043_v40 = vpop.xlane.xlu1 %3042 }
 0x830   : > { %v3046_v36 = vmul.f32 %v3043_v40, %v5048_v11 }
 0x832   : > { %v3048_v25 = vadd.f32 1e-05, %v3046_v36 }
 0x834   : > { %4510 = vrsqrt.f32 %v3048_v25  ;;  %vm3056_vm14 = vweird.f32 %v3048_v25 }
 0x837   : > { %v3045_v55 = vpop.xlane.xlu2 %3044 }
 0x838   : > { %v3047_v41 = vmul.f32 %v3045_v55, %v5048_v11 }
 0x83a   : > { %v4511_v45 = vpop.eup %4510  ;;  %v3049_v50 = vadd.f32 1e-05, %v3047_v41 }
 0x83b   : > { %v3051_v59 = vmul.f32 %v4511_v45, %v3048_v25  ;;  %vm3057_vm13 = vweird.f32 %v4511_v45 }
 0x83c   : > { %4512 = vrsqrt.f32 %v3049_v50  ;;  %vm3058_vm15 = vmor %vm3056_vm14, %vm3057_vm13  ;;  %vm3066_vm1 = vweird.f32 %v3049_v50 }
 0x83d   : > { %v3052_v47 = vmul.f32 %v4511_v45, %v3051_v59 }
 0x83f   : > { %v3053_v26 = vmul.f32 0.5, %v3052_v47 }
 0x841   : > { %v3054_v7 = vsub.f32 1.5, %v3053_v26 }
 0x842   : > { %v4513_v5 = vpop.eup %4512 }
 0x843   : > { %v3055_v13 = vmul.f32 %v4511_v45, %v3054_v7  ;;  %v3061_v53 = vmul.f32 %v4513_v5, %v3049_v50  ;;  %vm3067_vm0 = vweird.f32 %v4513_v5 }
 0x844   : > { %vm3068_vm2 = vmor %vm3066_vm1, %vm3067_vm0 }
 0x845   : > { %v3059_v24 = vsel %vm3058_vm15, %v4511_v45, %v3055_v13  ;;  %v3062_v1 = vmul.f32 %v4513_v5, %v3061_v53 }
 0x846   : > { %v3070_v11 = vmul.f32 %v3059_v24, %v3038_v37 }
 0x847   : > { %v3063_v49 = vmul.f32 0.5, %v3062_v1 }
 0x848   : > { %v3073_v62 = vmul.f32 %v3072_v44, %v3070_v11 }
 0x849   : > { %v3064_v12 = vsub.f32 1.5, %v3063_v49 }
 0x84a   : > { %v5557_v56 = vadd.f32 %v3075_v10, %v3073_v62 }
 0x84b   : > { %v3065_v33 = vmul.f32 %v4513_v5, %v3064_v12 }
 0x84c   : > { %3078 = vst [vmem:[#allocation2] sm:$0xff] %v5557_v56 }
 0x84d   : > { %v3069_v15 = vsel %vm3068_vm2, %v4513_v5, %v3065_v33 }
 0x84e   : > { %v3071_v31 = vmul.f32 %v3069_v15, %v3039_v61 }
 0x850   : > { %v3074_v32 = vmul.f32 %v3072_v44, %v3071_v31  ;;  %3083 = sbr.rel (%p4086_p1) target bundleno = 2305 (0x901), region = 68 }
 0x852   : > { %v5560_v29 = vadd.f32 %v3075_v10, %v3074_v32 }
 0x854   : > { %3079 = vst [vmem:[#allocation2 + $0x8] sm:$0xff] %v5560_v29 }
 0x855   : > { %v4145_v54 = vld [vmem:[%s5722_s8 + $0x70] sm:$0xf]  ;;  %v4344_v9 = vld [vmem:[%s5722_s8 + $0x74] sm:$0xf0]  ;;  %v4343_v48 = vld [vmem:[%s5722_s8 + $0x74] sm:$0xf]  ;;  %v3084_v13 = vpack.c.bf16 %v5560_v29, %v5557_v56 }
 0x856   : > { %v4146_v60 = vor.u32 %v4344_v9, %v4145_v54  ;;  %v4147_v17 = vld [vmem:[%s5722_s8 + $0x78] sm:$0xf0]  ;;  %v4137_v51 = vld [vmem:[%s5722_s8 + $0x60] sm:$0xf]  ;;  %v4342_v46 = vld [vmem:[%s5722_s8 + $0x64] sm:$0xf0] }
 0x857   : > { %v4150_v19 = vor.u32 %v4343_v48, %v4147_v17  ;;  %v4341_v0 = vld [vmem:[%s5722_s8 + $0x64] sm:$0xf]  ;;  %v4139_v43 = vld [vmem:[%s5722_s8 + $0x68] sm:$0xf0]  ;;  %v4138_v63 = vor.u32 %v4342_v46, %v4137_v51  ;;  %v4129_v8 = vld [vmem:[%s5722_s8 + $0x50] sm:$0xf] }
 0x858   : > { %3187 = vmatpush.bf16.msra.mxu0 %v4146_v60  ;;  %v4142_v35 = vor.u32 %v4341_v0, %v4139_v43  ;;  %v4340_v42 = vld [vmem:[%s5722_s8 + $0x54] sm:$0xf0]  ;;  %v4339_v23 = vld [vmem:[%s5722_s8 + $0x54] sm:$0xf]  ;;  %v4131_v21 = vld [vmem:[%s5722_s8 + $0x58] sm:$0xf0] }
 0x859   : > { %3201 = vmatpush.bf16.msra.mxu1 %v4150_v19  ;;  %v4130_v22 = vor.u32 %v4340_v42, %v4129_v8  ;;  %v4134_v16 = vor.u32 %v4339_v23, %v4131_v21  ;;  %v4121_v3 = vld [vmem:[%s5722_s8 + $0x40] sm:$0xf]  ;;  %v4338_v2 = vld [vmem:[%s5722_s8 + $0x44] sm:$0xf0]  ;;  %v4337_v28 = vld [vmem:[%s5722_s8 + $0x44] sm:$0xf] }
 0x85a   : > { %v4123_v4 = vld [vmem:[%s5722_s8 + $0x48] sm:$0xf0]  ;;  %v4122_v14 = vor.u32 %v4338_v2, %v4121_v3  ;;  %v4113_v30 = vld [vmem:[%s5722_s8 + $0x30] sm:$0xf]  ;;  %v4336_v18 = vld [vmem:[%s5722_s8 + $0x34] sm:$0xf0] }
 0x85b   : > { %v4126_v27 = vor.u32 %v4337_v28, %v4123_v4  ;;  %v4335_v38 = vld [vmem:[%s5722_s8 + $0x34] sm:$0xf]  ;;  %v4115_v39 = vld [vmem:[%s5722_s8 + $0x38] sm:$0xf0]  ;;  %v4114_v34 = vor.u32 %v4336_v18, %v4113_v30  ;;  %v4105_v37 = vld [vmem:[%s5722_s8 + $0x20] sm:$0xf] }
 0x85c   : > { %3188 = vmatpush.bf16.msra.mxu0 %v4138_v63  ;;  %v4118_v20 = vor.u32 %v4335_v38, %v4115_v39  ;;  %v4334_v6 = vld [vmem:[%s5722_s8 + $0x24] sm:$0xf0]  ;;  %v4333_v58 = vld [vmem:[%s5722_s8 + $0x24] sm:$0xf]  ;;  %v4107_v52 = vld [vmem:[%s5722_s8 + $0x28] sm:$0xf0] }
 0x85d   : > { %3202 = vmatpush.bf16.msra.mxu1 %v4142_v35  ;;  %v4106_v61 = vor.u32 %v4334_v6, %v4105_v37  ;;  %v4110_v57 = vor.u32 %v4333_v58, %v4107_v52  ;;  %v4097_v40 = vld [vmem:[%s5722_s8 + $0x10] sm:$0xf]  ;;  %v4332_v36 = vld [vmem:[%s5722_s8 + $0x14] sm:$0xf0]  ;;  %v4331_v25 = vld [vmem:[%s5722_s8 + $0x14] sm:$0xf] }
 0x85e   : > { %v4099_v55 = vld [vmem:[%s5722_s8 + $0x18] sm:$0xf0]  ;;  %v4098_v41 = vor.u32 %v4332_v36, %v4097_v40  ;;  %v4089_v50 = vld [vmem:[%s5722_s8] sm:$0xf]  ;;  %v4330_v59 = vld [vmem:[%s5722_s8 + $0x4] sm:$0xf0] }
 0x85f   : > { %v4102_v45 = vor.u32 %v4331_v25, %v4099_v55  ;;  %v4329_v47 = vld [vmem:[%s5722_s8 + $0x4] sm:$0xf]  ;;  %v4091_v26 = vld [vmem:[%s5722_s8 + $0x8] sm:$0xf0]  ;;  %v4090_v7 = vor.u32 %v4330_v59, %v4089_v50  ;;  %v3101_v53 = vld [vmem:[%s5723_s9] sm:$0x3] }
 0x860   : > { %3189 = vmatpush.bf16.msra.mxu0 %v4130_v22  ;;  %v4094_v5 = vor.u32 %v4329_v47, %v4091_v26  ;;  %v3103_v44 = vperm.slane %v3101_v53, 0  ;;  %v3104_v24 = vperm.slane %v3101_v53, 1 }
 0x861   : > { %3203 = vmatpush.bf16.msra.mxu1 %v4134_v16 }
 0x864   : > { %3190 = vmatpush.bf16.msra.mxu0 %v4122_v14 }
 0x865   : > { %3204 = vmatpush.bf16.msra.mxu1 %v4126_v27 }
 0x868   : > { %3191 = vmatpush.bf16.msra.mxu0 %v4114_v34 }
 0x869   : > { %3205 = vmatpush.bf16.msra.mxu1 %v4118_v20 }
 0x86c   : > { %3192 = vmatpush.bf16.msra.mxu0 %v4106_v61 }
 0x86d   : > { %3206 = vmatpush.bf16.msra.mxu1 %v4110_v57 }
 0x870   : > { %3193 = vmatpush.bf16.msra.mxu0 %v4098_v41 }
 0x871   : > { %3207 = vmatpush.bf16.msra.mxu1 %v4102_v45 }
 0x874   : > { %3194 = vmatpush.bf16.msra.mxu0 %v4090_v7 }
 0x875   : > { %3208 = vmatpush.bf16.msra.mxu1 %v4094_v5 }
 0x877   : > { %3195 = vmatmul.bf16.vlgmr.msra.gmra.mxu0 %v3084_v13 }
 0x878   : > { %3209 = vmatmul.bf16.vlgmr.msra.gmra.mxu1 %v3084_v13 }
 0x8f4   : > { %v3196_v1 = vpop.f32.mrf.mxu0 }
 0x8f5   : > { %v3197_v10 = vadd.f32 %v3196_v1, %v3103_v44  ;;  %v3210_v11 = vpop.f32.mrf.mxu1 }
 0x8f6   : > { %v3211_v49 = vadd.f32 %v3210_v11, %v3104_v24 }
 0x8f7   : > { %3215 = vst [vmem:[%s4777_s28] sm:$0xff] %v3197_v10 }
 0x8f8   : > { %3216 = vst [vmem:[%s4777_s28 + $0x8] sm:$0xff] %v3211_v49 }
 0x8fc   : > { %v3198_v62 = vpop.f32.mrf.mxu0 }
 0x8fd   : > { %v3199_v12 = vadd.f32 %v3198_v62, %v3103_v44  ;;  %v3212_v56 = vpop.f32.mrf.mxu1 }
 0x8fe   : > { %v3213_v33 = vadd.f32 %v3212_v56, %v3104_v24 }
 0x8ff   : > { %3217 = vst [vmem:[%s4777_s28 + $0x10] sm:$0xff] %v3199_v12 }
 0x900   : > { %3218 = vst [vmem:[%s4777_s28 + $0x18] sm:$0xff] %v3213_v33 }
 0x901 PF: > { %s5770_s10 = sld [smem:[#allocation7_spill]]  ;;  %s4345_s18 = sshll.u32 %s4597_s17, 5 }
 0x902   : > { %s5772_s0 = sld [smem:[#allocation18_spill]]  ;;  %s3232_s20 = sshll.u32 %s4777_s28, 4  ;;  %s3233_s20 = int_to_ptr.vmem [resolvable:$true] %s3232_s20 }
 0x907   : > { %s5773_s21 = sand.u32 1, %s5770_s10  }
 0x908   : > { %s3231_s14 = scalar_lea.hbm %s5772_s0, %s4345_s18  ;;  %s3220_s12 = scalar_lea.sflag [#allocation4], %s5773_s21 }
 0x909   : > { %s3234_s11 = sshll.u32 %s3231_s14, 4  ;;  %s4535_s17 = scalar_lea.hbm %s5772_s0, 64  ;;  %s3235_s11 = int_to_ptr.hbm [resolvable:$true] %s3234_s11 }
 0x90a   : > { %s4529_s23 = sshra.s32 %s3235_s11, 4  ;;  %s4530_s23 = int_to_ptr.hbm [resolvable:$true] %s4529_s23 }
 0x90b   : > { %s4531_s27 = scalar_lea.hbm %s4530_s23, 32  ;;  %p4536_p6 = scmp.lt.s32.totalorder %s4530_s23, %s5772_s0 }
 0x90c   : > { %p4532_p2 = scmp.ne.s32.totalorder %s4530_s23, %s4531_s27  ;;  %p4537_p7 = scmp.lt.s32.totalorder %s4535_s17, %s4531_s27 }
 0x90e   : > { %p4533_p4 = pnand %p4532_p2, %p4720_p3  ;;  %p4538_p8 = por %p4537_p7, %p4536_p6 }
 0x910   : > { %p4534_p5 = pneg %p4533_p4 }
 0x912   : > { %p4539_p10 = pnand %p4538_p8, %p4534_p5 }
 0x914   : > { %4542 = shalt.err (!%p4539_p10)
}
 0x915   : > { %s4614_s28 = smov 256   ;;  %s4615_s22 = smov 16  }
 0x916   : > { %4379 = dma.vmem_to_hbm [thread:$0]  (%p4720_p3), %s3233_s20, 512, %s3235_s11, %s3220_s12, %s4614_s28, %s4614_s28, %s4615_s22  }
 0x917 PF: > { %s5774_s29 = sld [smem:[#allocation11_spill]] }
 0x918   : > { %s5775_s15 = sld [smem:[#allocation6_spill]] }
 0x91d   : > { %p4385_p11 = scmp.ge.s32.totalorder %s5774_s29, 2 }
 0x91e   : > { %s3249_s18 = sand.u32 1, %s5775_s15  }
 0x91f   : > { %p4382_p12 = pnand %p4385_p11, %p4730_p9  ;;  %s3250_s16 = scalar_lea.sflag [#allocation4], %s3249_s18 }
 0x921   : > { %p4383_p13 = pneg %p4382_p12 }
 0x923   : > { %4576 = dma.done.wait (%p4383_p13), %s3250_s16, 512  }
 0x924   : > { %4578 = vsyncadd (%p4383_p13), %s3250_s16, 4294966784  ;;  %s23_s20 = sadd.s32 1, %s5774_s29   ;;  %s5777_s13 = sld [smem:[#allocation7_spill]] }
 0x925   : > { %p20_p0 = scmp.ge.s32.totalorder %s23_s20, 6   ;;  %s5778_s14 = sld [smem:[#allocation8_spill]] }
 0x926   : > { %s5779_s15 = sld [smem:[#allocation16_spill]] }
 0x927   : > { %s5780_s16 = sld [smem:[#allocation9_spill]]  ;;  %22 = sbr.rel (!%p20_p0) target bundleno = 8 (0x8), region = 118 }
 0x928   : > { %s5781_s17 = sld [smem:[#allocation10_spill]] }
 0x929   : > { %s5782_s18 = sld [smem:[#allocation12_spill]] }
 0x92a   : > { %s5783_s19 = sld [smem:[#allocation14_spill]] }
 0x92c   :  { %3256 = vsyncpa [#allocation4], 1 }
 0x92d   :  { %3258 = vsyncpa [#allocation4 + $0x1], 1 }

</bundles_post_ra>
